<compile_context>
chip_gen: v7x
topology: tpu7x:2x2x1
jax: 0.10.0
libtpu: 0.0.40
codegen_flags: <defaults>
</compile_context>

<pallas_src>
import functools

import jax
import jax.numpy as jnp
from jax.experimental import pallas as pl
from jax.experimental.pallas import tpu as pltpu

# ---- module hyper-parameters (from __init__ defaults) -----------------------
SIGMAS = (0.5, 1.0, 2.0, 4.0, 8.0)
DATA_RANGE = 1.0
K = (0.01, 0.03)
ALPHA = 0.025
COMPENSATION = 200.0
FILTER_SIZE = int(4 * SIGMAS[-1] + 1)   # 33
PAD = int(2 * SIGMAS[-1])               # 16
NFILT = 3 * len(SIGMAS)                 # 15
NSIG = len(SIGMAS)                      # 5 unique sigmas
C1 = (K[0] * DATA_RANGE) ** 2
C2 = (K[1] * DATA_RANGE) ** 2


# ---- deterministic "weights": gaussian filters as Toeplitz matmul operands --
def _gauss_1d(size, sigma):
    coords = jnp.arange(size, dtype=jnp.float32) - (size // 2)
    g = jnp.exp(-(coords ** 2) / (2.0 * sigma ** 2))
    return g / jnp.sum(g)


def _toeplitz(g1, out_dim, in_dim, fsize):
    # T[o, i] = g1[i - o] if 0 <= i - o < fsize else 0   -> shape (out_dim, in_dim)
    o = jnp.arange(out_dim)[:, None]
    i = jnp.arange(in_dim)[None, :]
    k = i - o
    valid = (k >= 0) & (k < fsize)
    return jnp.where(valid, g1[jnp.clip(k, 0, fsize - 1)], 0.0).astype(jnp.float32)


# ---- static "plan": dedupe the 15 grouped filters to unique (chan, sigma) ----
def _build_plan(C):
    per_g = NFILT // C
    # multiplicity of each unique (channel, sigma_idx) conv in the cs product
    cs_counts = {}
    for oc in range(NFILT):
        key = (oc // per_g, oc // 3)
        cs_counts[key] = cs_counts.get(key, 0) + 1
    # lM uses the last three output channels of the grouped conv
    l_counts = {}
    for oc in range(NFILT - 3, NFILT):
        key = (oc // per_g, oc // 3)
        l_counts[key] = l_counts.get(key, 0) + 1
    # per-channel sigma indices (always a contiguous, sorted range)
    chan_sigmas = {
        c: tuple(sorted(s for (cc, s) in cs_counts if cc == c)) for c in range(C)
    }
    for c, sigs in chan_sigmas.items():
        assert sigs == tuple(range(sigs[0], sigs[0] + len(sigs)))
    # L1 branch: channel c is convolved with filter (NFILT - C + c); group the
    # channels that share a sigma so conv-linearity lets us sum-then-convolve.
    l1_groups = {}
    for c in range(C):
        l1_groups.setdefault((NFILT - C + c) // 3, []).append(c)
    l1_groups = {s: tuple(v) for s, v in l1_groups.items()}
    return chan_sigmas, cs_counts, l_counts, l1_groups


# ---- Pallas kernel: one batch element per grid step --------------------------
def _ms_ssim_kernel(xp_ref, yp_ref, th_ref, tw_ref, out_ref, *,
                    C, H, W, Hp, Wp,
                    chan_sigmas, cs_counts, l_counts, l1_groups):
    xp = xp_ref[0]          # (C, Hp, Wp)  zero-padded img1
    yp = yp_ref[0]          # (C, Hp, Wp)  zero-padded img2

    def ipow_mul(acc, v, n):
        # acc * v**n  with n a small static int (explicit multiplies)
        p = v
        for _ in range(n - 1):
            p = p * v
        return p if acc is None else acc * p

    PIcs = None
    lM = None

    for c in range(C):
        x = xp[c]
        y = yp[c]
        # five conv operands of this channel, lane-concatenated -> one wide
        # row-pass matmul shared by every sigma of this channel.
        ops = jnp.concatenate([x, y, x * x, y * y, x * y], axis=1)   # (Hp, 5*Wp)

        sig_list = chan_sigmas[c]
        s_lo, n_sig = sig_list[0], len(sig_list)
        th_c = th_ref[pl.ds(s_lo * H, n_sig * H), :]                 # (n_sig*H, Hp)
        rows = jnp.dot(th_c, ops,
                       preferred_element_type=jnp.float32)           # (n_sig*H, 5*Wp)

        for si, s in enumerate(sig_list):
            tw_s = tw_ref[s]                                         # (Wp, W)
            r = rows[si * H:(si + 1) * H, :]                         # (H, 5*Wp)

            def col(k):
                return jnp.dot(r[:, k * Wp:(k + 1) * Wp], tw_s,
                               preferred_element_type=jnp.float32)   # (H, W)

            mux, muy = col(0), col(1)
            ex2, ey2, exy = col(2), col(3), col(4)
            mux2 = mux * mux
            muy2 = muy * muy
            muxy = mux * muy
            sigmax2 = ex2 - mux2
            sigmay2 = ey2 - muy2
            sigmaxy = exy - muxy

            cs = (2.0 * sigmaxy + C2) / (sigmax2 + sigmay2 + C2)
            PIcs = ipow_mul(PIcs, cs, cs_counts[(c, s)])
            if (c, s) in l_counts:
                lc = (2.0 * muxy + C1) / (mux2 + muy2 + C1)
                lM = ipow_mul(lM, lc, l_counts[(c, s)])

    loss_ms_ssim = 1.0 - lM * PIcs

    # gaussian-weighted L1: conv is linear, so channels that share a filter
    # are summed first and convolved once (|pad(x)-pad(y)| == pad(|x-y|)).
    gl1 = None
    for s, chans in l1_groups.items():
        d = None
        for c in chans:
            ad = jnp.abs(xp[c] - yp[c])
            d = ad if d is None else d + ad
        th_s = th_ref[pl.ds(s * H, H), :]                            # (H, Hp)
        g = jnp.dot(jnp.dot(th_s, d, preferred_element_type=jnp.float32),
                    tw_ref[s], preferred_element_type=jnp.float32)   # (H, W)
        gl1 = g if gl1 is None else gl1 + g
    gl1 = gl1 * (1.0 / float(C))

    loss = ALPHA * loss_ms_ssim + (1.0 - ALPHA) * gl1 * (1.0 / DATA_RANGE)
    # per-batch partial sum (scalar) -> no wide (H,W) writeback, no masked
    # narrow-lane stores; the tiny cross-batch mean happens in the wrapper.
    out_ref[0] = COMPENSATION * jnp.sum(loss, keepdims=True)         # (1, 1)


# ---- wrapper -----------------------------------------------------------------
def ms_ssim_loss(img1, img2):
    N, C, H, W = img1.shape
    assert NFILT % C == 0, "out_channels (15) must be divisible by C (grouped conv)"
    Hp, Wp = H + 2 * PAD, W + 2 * PAD

    chan_sigmas, cs_counts, l_counts, l1_groups = _build_plan(C)

    # Only the 5 unique sigmas (the 15 grouped filters are duplicates of them).
    g1s = [_gauss_1d(FILTER_SIZE, s) for s in SIGMAS]
    th_all = jnp.concatenate(
        [_toeplitz(g, H, Hp, FILTER_SIZE) for g in g1s], axis=0)       # (5*H, Hp)
    tw_all = jnp.stack(
        [_toeplitz(g, W, Wp, FILTER_SIZE).T for g in g1s], axis=0)     # (5, Wp, W)

    pad_cfg = ((0, 0), (0, 0), (PAD, PAD), (PAD, PAD))
    xp = jnp.pad(img1.astype(jnp.float32), pad_cfg)
    yp = jnp.pad(img2.astype(jnp.float32), pad_cfg)

    kernel = functools.partial(
        _ms_ssim_kernel, C=C, H=H, W=W, Hp=Hp, Wp=Wp,
        chan_sigmas=chan_sigmas, cs_counts=cs_counts,
        l_counts=l_counts, l1_groups=l1_groups)

    per_batch = pl.pallas_call(
        kernel,
        out_shape=jax.ShapeDtypeStruct((N, 1, 1), jnp.float32),
        grid_spec=pltpu.PrefetchScalarGridSpec(
            num_scalar_prefetch=0,
            grid=(N,),
            in_specs=[
                pl.BlockSpec((1, C, Hp, Wp), lambda n: (n, 0, 0, 0)),
                pl.BlockSpec((1, C, Hp, Wp), lambda n: (n, 0, 0, 0)),
                pl.BlockSpec((NSIG * H, Hp), lambda n: (0, 0)),
                pl.BlockSpec((NSIG, Wp, W), lambda n: (0, 0, 0)),
            ],
            out_specs=pl.BlockSpec((1, 1, 1), lambda n: (n, 0, 0)),
        ),
        compiler_params=pltpu.CompilerParams(
            dimension_semantics=("parallel",),        # batch is independent
            vmem_limit_bytes=48 * 1024 * 1024,        # > default scoped, < v7x phys
        ),
    )(xp, yp, th_all, tw_all)

    # final scalar reduction (tiny) in glue, matching loss.mean() over (N,H,W)
    return jnp.sum(per_batch) / (N * H * W)


# ---- pure-JAX reference (mirrors the PyTorch forward) -------------------------
def _ref_loss(img1, img2):
    N, C, H, W = img1.shape
    g1s = [_gauss_1d(FILTER_SIZE, SIGMAS[m // 3]) for m in range(NFILT)]
    g2d = jnp.stack([jnp.outer(g, g) for g in g1s])[:, None]   # (15, 1, 33, 33)

    def conv(x, w, groups):
        return jax.lax.conv_general_dilated(
            x, w, (1, 1), [(PAD, PAD), (PAD, PAD)],
            dimension_numbers=("NCHW", "OIHW", "NCHW"),
            feature_group_count=groups)

    mux = conv(img1, g2d, C)
    muy = conv(img2, g2d, C)
    mux2, muy2, muxy = mux * mux, muy * muy, mux * muy
    sigmax2 = conv(img1 * img1, g2d, C) - mux2
    sigmay2 = conv(img2 * img2, g2d, C) - muy2
    sigmaxy = conv(img1 * img2, g2d, C) - muxy
    lc = (2 * muxy + C1) / (mux2 + muy2 + C1)
    cs = (2 * sigmaxy + C2) / (sigmax2 + sigmay2 + C2)
    lM = lc[:, -1] * lc[:, -2] * lc[:, -3]
    PIcs = jnp.prod(cs, axis=1)
    loss_ms_ssim = 1 - lM * PIcs
    loss_l1 = jnp.abs(img1 - img2)
    gaussian_l1 = jnp.mean(conv(loss_l1, g2d[-C:], C), axis=1)
    loss = ALPHA * loss_ms_ssim + (1 - ALPHA) * gaussian_l1 / DATA_RANGE
    return jnp.mean(COMPENSATION * loss)


if __name__ == "__main__":
    key = jax.random.PRNGKey(0)
    k1, k2 = jax.random.split(key)
    # grouped conv with 15 filters requires C | 15 -> use C = 3 (RGB-like)
    img1 = jax.random.uniform(k1, (2, 3, 16, 16), dtype=jnp.float32)
    img2 = jax.random.uniform(k2, (2, 3, 16, 16), dtype=jnp.float32)

    loss = jax.block_until_ready(ms_ssim_loss(img1, img2))
    loss_ref = jax.block_until_ready(_ref_loss(img1, img2))
    assert jnp.isfinite(loss), "non-finite loss"
    assert jnp.allclose(loss, loss_ref, rtol=2e-3, atol=2e-3), (loss, loss_ref)
    print("KERNEL_OK")
</pallas_src>

<mosaic_0001>
module attributes {stable_mosaic.version = 11 : i64} {
  func.func @_ms_ssim_kernel(%arg0: i32, %arg1: memref<1x3x48x48xf32, #tpu.memory_space<vmem>>, %arg2: memref<1x3x48x48xf32, #tpu.memory_space<vmem>>, %arg3: memref<80x48xf32, #tpu.memory_space<vmem>>, %arg4: memref<5x48x16xf32, #tpu.memory_space<vmem>>, %arg5: memref<1x1x1xf32, #tpu.memory_space<vmem>>) attributes {dimension_semantics = [#tpu.dimension_semantics<parallel>], iteration_bounds = array<i64: 2>, scalar_prefetch = 0 : i64, scratch_operands = 0 : i64, tpu.core_type = #tpu.core_type<tc>, window_params = [{transform_indices = @transform_0, window_bounds = array<i64: 1, 3, 48, 48>}, {transform_indices = @transform_1, window_bounds = array<i64: 1, 3, 48, 48>}, {pipeline_mode = #tpu.pipeline_mode<synchronous>, transform_indices = @transform_2, window_bounds = array<i64: 80, 48>}, {pipeline_mode = #tpu.pipeline_mode<synchronous>, transform_indices = @transform_3, window_bounds = array<i64: 5, 48, 16>}, {transform_indices = @transform_4, window_bounds = array<i64: 1, 1, 1>}]} {
    %c0 = arith.constant 0 : index
    %c0_0 = arith.constant 0 : index
    %c0_1 = arith.constant 0 : index
    %c0_2 = arith.constant 0 : index
    %0 = vector.load %arg1[%c0, %c0_0, %c0_1, %c0_2] : memref<1x3x48x48xf32, #tpu.memory_space<vmem>>, vector<1x3x48x48xf32>
    %1 = vector.shape_cast %0 : vector<1x3x48x48xf32> to vector<3x48x48xf32>
    %c0_3 = arith.constant 0 : index
    %c0_4 = arith.constant 0 : index
    %c0_5 = arith.constant 0 : index
    %c0_6 = arith.constant 0 : index
    %2 = vector.load %arg2[%c0_3, %c0_4, %c0_5, %c0_6] : memref<1x3x48x48xf32, #tpu.memory_space<vmem>>, vector<1x3x48x48xf32>
    %3 = vector.shape_cast %2 : vector<1x3x48x48xf32> to vector<3x48x48xf32>
    %4 = vector.extract_strided_slice %1 {offsets = [0, 0, 0], sizes = [1, 48, 48], strides = [1, 1, 1]} : vector<3x48x48xf32> to vector<1x48x48xf32>
    %5 = vector.shape_cast %4 : vector<1x48x48xf32> to vector<48x48xf32>
    %6 = vector.extract_strided_slice %3 {offsets = [0, 0, 0], sizes = [1, 48, 48], strides = [1, 1, 1]} : vector<3x48x48xf32> to vector<1x48x48xf32>
    %7 = vector.shape_cast %6 : vector<1x48x48xf32> to vector<48x48xf32>
    %8 = arith.mulf %5, %5 : vector<48x48xf32>
    %9 = arith.mulf %7, %7 : vector<48x48xf32>
    %10 = arith.mulf %5, %7 : vector<48x48xf32>
    %11 = tpu.concatenate %5, %7, %8, %9, %10 in 1 : vector<48x48xf32>, vector<48x48xf32>, vector<48x48xf32>, vector<48x48xf32>, vector<48x48xf32> -> vector<48x240xf32>
    %c0_7 = arith.constant 0 : index
    %c0_8 = arith.constant 0 : index
    %12 = vector.load %arg3[%c0_7, %c0_8] : memref<80x48xf32, #tpu.memory_space<vmem>>, vector<32x48xf32>
    %cst = arith.constant dense<0.000000e+00> : vector<32x240xf32>
    %13 = tpu.matmul %12, %11, %cst {dimension_numbers = #tpu.dot_dimension_numbers<[1], [0], [0], [1], [0, 0, 1, 1], [], []>} : vector<32x48xf32>, vector<48x240xf32>, vector<32x240xf32> -> vector<32x240xf32>
    %c0_9 = arith.constant 0 : index
    %c0_10 = arith.constant 0 : index
    %c0_11 = arith.constant 0 : index
    %14 = vector.load %arg4[%c0_9, %c0_10, %c0_11] : memref<5x48x16xf32, #tpu.memory_space<vmem>>, vector<1x48x16xf32>
    %15 = vector.shape_cast %14 : vector<1x48x16xf32> to vector<48x16xf32>
    %16 = vector.extract_strided_slice %13 {offsets = [0, 0], sizes = [16, 240], strides = [1, 1]} : vector<32x240xf32> to vector<16x240xf32>
    %17 = vector.extract_strided_slice %16 {offsets = [0, 0], sizes = [16, 48], strides = [1, 1]} : vector<16x240xf32> to vector<16x48xf32>
    %cst_12 = arith.constant dense<0.000000e+00> : vector<16x16xf32>
    %18 = tpu.matmul %17, %15, %cst_12 {dimension_numbers = #tpu.dot_dimension_numbers<[1], [0], [0], [1], [0, 0, 1, 1], [], []>} : vector<16x48xf32>, vector<48x16xf32>, vector<16x16xf32> -> vector<16x16xf32>
    %19 = vector.extract_strided_slice %16 {offsets = [0, 48], sizes = [16, 48], strides = [1, 1]} : vector<16x240xf32> to vector<16x48xf32>
    %cst_13 = arith.constant dense<0.000000e+00> : vector<16x16xf32>
    %20 = tpu.matmul %19, %15, %cst_13 {dimension_numbers = #tpu.dot_dimension_numbers<[1], [0], [0], [1], [0, 0, 1, 1], [], []>} : vector<16x48xf32>, vector<48x16xf32>, vector<16x16xf32> -> vector<16x16xf32>
    %21 = vector.extract_strided_slice %16 {offsets = [0, 96], sizes = [16, 48], strides = [1, 1]} : vector<16x240xf32> to vector<16x48xf32>
    %cst_14 = arith.constant dense<0.000000e+00> : vector<16x16xf32>
    %22 = tpu.matmul %21, %15, %cst_14 {dimension_numbers = #tpu.dot_dimension_numbers<[1], [0], [0], [1], [0, 0, 1, 1], [], []>} : vector<16x48xf32>, vector<48x16xf32>, vector<16x16xf32> -> vector<16x16xf32>
    %23 = vector.extract_strided_slice %16 {offsets = [0, 144], sizes = [16, 48], strides = [1, 1]} : vector<16x240xf32> to vector<16x48xf32>
    %cst_15 = arith.constant dense<0.000000e+00> : vector<16x16xf32>
    %24 = tpu.matmul %23, %15, %cst_15 {dimension_numbers = #tpu.dot_dimension_numbers<[1], [0], [0], [1], [0, 0, 1, 1], [], []>} : vector<16x48xf32>, vector<48x16xf32>, vector<16x16xf32> -> vector<16x16xf32>
    %25 = vector.extract_strided_slice %16 {offsets = [0, 192], sizes = [16, 48], strides = [1, 1]} : vector<16x240xf32> to vector<16x48xf32>
    %cst_16 = arith.constant dense<0.000000e+00> : vector<16x16xf32>
    %26 = tpu.matmul %25, %15, %cst_16 {dimension_numbers = #tpu.dot_dimension_numbers<[1], [0], [0], [1], [0, 0, 1, 1], [], []>} : vector<16x48xf32>, vector<48x16xf32>, vector<16x16xf32> -> vector<16x16xf32>
    %27 = arith.mulf %18, %18 : vector<16x16xf32>
    %28 = arith.mulf %20, %20 : vector<16x16xf32>
    %29 = arith.mulf %18, %20 : vector<16x16xf32>
    %30 = arith.subf %22, %27 : vector<16x16xf32>
    %31 = arith.subf %24, %28 : vector<16x16xf32>
    %32 = arith.subf %26, %29 : vector<16x16xf32>
    %cst_17 = arith.constant 2.000000e+00 : f32
    %33 = vector.broadcast %cst_17 : f32 to vector<16x16xf32>
    %34 = arith.mulf %33, %32 : vector<16x16xf32>
    %cst_18 = arith.constant 8.99999984E-4 : f32
    %35 = vector.broadcast %cst_18 : f32 to vector<16x16xf32>
    %36 = arith.addf %34, %35 : vector<16x16xf32>
    %37 = arith.addf %30, %31 : vector<16x16xf32>
    %cst_19 = arith.constant 8.99999984E-4 : f32
    %38 = vector.broadcast %cst_19 : f32 to vector<16x16xf32>
    %39 = arith.addf %37, %38 : vector<16x16xf32>
    %40 = arith.divf %36, %39 : vector<16x16xf32>
    %41 = arith.mulf %40, %40 : vector<16x16xf32>
    %42 = arith.mulf %41, %40 : vector<16x16xf32>
    %c1 = arith.constant 1 : index
    %c0_20 = arith.constant 0 : index
    %c0_21 = arith.constant 0 : index
    %43 = vector.load %arg4[%c1, %c0_20, %c0_21] : memref<5x48x16xf32, #tpu.memory_space<vmem>>, vector<1x48x16xf32>
    %44 = vector.shape_cast %43 : vector<1x48x16xf32> to vector<48x16xf32>
    %45 = vector.extract_strided_slice %13 {offsets = [16, 0], sizes = [16, 240], strides = [1, 1]} : vector<32x240xf32> to vector<16x240xf32>
    %46 = vector.extract_strided_slice %45 {offsets = [0, 0], sizes = [16, 48], strides = [1, 1]} : vector<16x240xf32> to vector<16x48xf32>
    %cst_22 = arith.constant dense<0.000000e+00> : vector<16x16xf32>
    %47 = tpu.matmul %46, %44, %cst_22 {dimension_numbers = #tpu.dot_dimension_numbers<[1], [0], [0], [1], [0, 0, 1, 1], [], []>} : vector<16x48xf32>, vector<48x16xf32>, vector<16x16xf32> -> vector<16x16xf32>
    %48 = vector.extract_strided_slice %45 {offsets = [0, 48], sizes = [16, 48], strides = [1, 1]} : vector<16x240xf32> to vector<16x48xf32>
    %cst_23 = arith.constant dense<0.000000e+00> : vector<16x16xf32>
    %49 = tpu.matmul %48, %44, %cst_23 {dimension_numbers = #tpu.dot_dimension_numbers<[1], [0], [0], [1], [0, 0, 1, 1], [], []>} : vector<16x48xf32>, vector<48x16xf32>, vector<16x16xf32> -> vector<16x16xf32>
    %50 = vector.extract_strided_slice %45 {offsets = [0, 96], sizes = [16, 48], strides = [1, 1]} : vector<16x240xf32> to vector<16x48xf32>
    %cst_24 = arith.constant dense<0.000000e+00> : vector<16x16xf32>
    %51 = tpu.matmul %50, %44, %cst_24 {dimension_numbers = #tpu.dot_dimension_numbers<[1], [0], [0], [1], [0, 0, 1, 1], [], []>} : vector<16x48xf32>, vector<48x16xf32>, vector<16x16xf32> -> vector<16x16xf32>
    %52 = vector.extract_strided_slice %45 {offsets = [0, 144], sizes = [16, 48], strides = [1, 1]} : vector<16x240xf32> to vector<16x48xf32>
    %cst_25 = arith.constant dense<0.000000e+00> : vector<16x16xf32>
    %53 = tpu.matmul %52, %44, %cst_25 {dimension_numbers = #tpu.dot_dimension_numbers<[1], [0], [0], [1], [0, 0, 1, 1], [], []>} : vector<16x48xf32>, vector<48x16xf32>, vector<16x16xf32> -> vector<16x16xf32>
    %54 = vector.extract_strided_slice %45 {offsets = [0, 192], sizes = [16, 48], strides = [1, 1]} : vector<16x240xf32> to vector<16x48xf32>
    %cst_26 = arith.constant dense<0.000000e+00> : vector<16x16xf32>
    %55 = tpu.matmul %54, %44, %cst_26 {dimension_numbers = #tpu.dot_dimension_numbers<[1], [0], [0], [1], [0, 0, 1, 1], [], []>} : vector<16x48xf32>, vector<48x16xf32>, vector<16x16xf32> -> vector<16x16xf32>
    %56 = arith.mulf %47, %47 : vector<16x16xf32>
    %57 = arith.mulf %49, %49 : vector<16x16xf32>
    %58 = arith.mulf %47, %49 : vector<16x16xf32>
    %59 = arith.subf %51, %56 : vector<16x16xf32>
    %60 = arith.subf %53, %57 : vector<16x16xf32>
    %61 = arith.subf %55, %58 : vector<16x16xf32>
    %cst_27 = arith.constant 2.000000e+00 : f32
    %62 = vector.broadcast %cst_27 : f32 to vector<16x16xf32>
    %63 = arith.mulf %62, %61 : vector<16x16xf32>
    %cst_28 = arith.constant 8.99999984E-4 : f32
    %64 = vector.broadcast %cst_28 : f32 to vector<16x16xf32>
    %65 = arith.addf %63, %64 : vector<16x16xf32>
    %66 = arith.addf %59, %60 : vector<16x16xf32>
    %cst_29 = arith.constant 8.99999984E-4 : f32
    %67 = vector.broadcast %cst_29 : f32 to vector<16x16xf32>
    %68 = arith.addf %66, %67 : vector<16x16xf32>
    %69 = arith.divf %65, %68 : vector<16x16xf32>
    %70 = arith.mulf %69, %69 : vector<16x16xf32>
    %71 = arith.mulf %42, %70 : vector<16x16xf32>
    %72 = vector.extract_strided_slice %1 {offsets = [1, 0, 0], sizes = [1, 48, 48], strides = [1, 1, 1]} : vector<3x48x48xf32> to vector<1x48x48xf32>
    %73 = vector.shape_cast %72 : vector<1x48x48xf32> to vector<48x48xf32>
    %74 = vector.extract_strided_slice %3 {offsets = [1, 0, 0], sizes = [1, 48, 48], strides = [1, 1, 1]} : vector<3x48x48xf32> to vector<1x48x48xf32>
    %75 = vector.shape_cast %74 : vector<1x48x48xf32> to vector<48x48xf32>
    %76 = arith.mulf %73, %73 : vector<48x48xf32>
    %77 = arith.mulf %75, %75 : vector<48x48xf32>
    %78 = arith.mulf %73, %75 : vector<48x48xf32>
    %79 = tpu.concatenate %73, %75, %76, %77, %78 in 1 : vector<48x48xf32>, vector<48x48xf32>, vector<48x48xf32>, vector<48x48xf32>, vector<48x48xf32> -> vector<48x240xf32>
    %c16 = arith.constant 16 : index
    %c0_30 = arith.constant 0 : index
    %80 = vector.load %arg3[%c16, %c0_30] : memref<80x48xf32, #tpu.memory_space<vmem>>, vector<48x48xf32>
    %cst_31 = arith.constant dense<0.000000e+00> : vector<48x240xf32>
    %81 = tpu.matmul %80, %79, %cst_31 {dimension_numbers = #tpu.dot_dimension_numbers<[1], [0], [0], [1], [0, 0, 1, 1], [], []>} : vector<48x48xf32>, vector<48x240xf32>, vector<48x240xf32> -> vector<48x240xf32>
    %c1_32 = arith.constant 1 : index
    %c0_33 = arith.constant 0 : index
    %c0_34 = arith.constant 0 : index
    %82 = vector.load %arg4[%c1_32, %c0_33, %c0_34] : memref<5x48x16xf32, #tpu.memory_space<vmem>>, vector<1x48x16xf32>
    %83 = vector.shape_cast %82 : vector<1x48x16xf32> to vector<48x16xf32>
    %84 = vector.extract_strided_slice %81 {offsets = [0, 0], sizes = [16, 240], strides = [1, 1]} : vector<48x240xf32> to vector<16x240xf32>
    %85 = vector.extract_strided_slice %84 {offsets = [0, 0], sizes = [16, 48], strides = [1, 1]} : vector<16x240xf32> to vector<16x48xf32>
    %cst_35 = arith.constant dense<0.000000e+00> : vector<16x16xf32>
    %86 = tpu.matmul %85, %83, %cst_35 {dimension_numbers = #tpu.dot_dimension_numbers<[1], [0], [0], [1], [0, 0, 1, 1], [], []>} : vector<16x48xf32>, vector<48x16xf32>, vector<16x16xf32> -> vector<16x16xf32>
    %87 = vector.extract_strided_slice %84 {offsets = [0, 48], sizes = [16, 48], strides = [1, 1]} : vector<16x240xf32> to vector<16x48xf32>
    %cst_36 = arith.constant dense<0.000000e+00> : vector<16x16xf32>
    %88 = tpu.matmul %87, %83, %cst_36 {dimension_numbers = #tpu.dot_dimension_numbers<[1], [0], [0], [1], [0, 0, 1, 1], [], []>} : vector<16x48xf32>, vector<48x16xf32>, vector<16x16xf32> -> vector<16x16xf32>
    %89 = vector.extract_strided_slice %84 {offsets = [0, 96], sizes = [16, 48], strides = [1, 1]} : vector<16x240xf32> to vector<16x48xf32>
    %cst_37 = arith.constant dense<0.000000e+00> : vector<16x16xf32>
    %90 = tpu.matmul %89, %83, %cst_37 {dimension_numbers = #tpu.dot_dimension_numbers<[1], [0], [0], [1], [0, 0, 1, 1], [], []>} : vector<16x48xf32>, vector<48x16xf32>, vector<16x16xf32> -> vector<16x16xf32>
    %91 = vector.extract_strided_slice %84 {offsets = [0, 144], sizes = [16, 48], strides = [1, 1]} : vector<16x240xf32> to vector<16x48xf32>
    %cst_38 = arith.constant dense<0.000000e+00> : vector<16x16xf32>
    %92 = tpu.matmul %91, %83, %cst_38 {dimension_numbers = #tpu.dot_dimension_numbers<[1], [0], [0], [1], [0, 0, 1, 1], [], []>} : vector<16x48xf32>, vector<48x16xf32>, vector<16x16xf32> -> vector<16x16xf32>
    %93 = vector.extract_strided_slice %84 {offsets = [0, 192], sizes = [16, 48], strides = [1, 1]} : vector<16x240xf32> to vector<16x48xf32>
    %cst_39 = arith.constant dense<0.000000e+00> : vector<16x16xf32>
    %94 = tpu.matmul %93, %83, %cst_39 {dimension_numbers = #tpu.dot_dimension_numbers<[1], [0], [0], [1], [0, 0, 1, 1], [], []>} : vector<16x48xf32>, vector<48x16xf32>, vector<16x16xf32> -> vector<16x16xf32>
    %95 = arith.mulf %86, %86 : vector<16x16xf32>
    %96 = arith.mulf %88, %88 : vector<16x16xf32>
    %97 = arith.mulf %86, %88 : vector<16x16xf32>
    %98 = arith.subf %90, %95 : vector<16x16xf32>
    %99 = arith.subf %92, %96 : vector<16x16xf32>
    %100 = arith.subf %94, %97 : vector<16x16xf32>
    %cst_40 = arith.constant 2.000000e+00 : f32
    %101 = vector.broadcast %cst_40 : f32 to vector<16x16xf32>
    %102 = arith.mulf %101, %100 : vector<16x16xf32>
    %cst_41 = arith.constant 8.99999984E-4 : f32
    %103 = vector.broadcast %cst_41 : f32 to vector<16x16xf32>
    %104 = arith.addf %102, %103 : vector<16x16xf32>
    %105 = arith.addf %98, %99 : vector<16x16xf32>
    %cst_42 = arith.constant 8.99999984E-4 : f32
    %106 = vector.broadcast %cst_42 : f32 to vector<16x16xf32>
    %107 = arith.addf %105, %106 : vector<16x16xf32>
    %108 = arith.divf %104, %107 : vector<16x16xf32>
    %109 = arith.mulf %71, %108 : vector<16x16xf32>
    %c2 = arith.constant 2 : index
    %c0_43 = arith.constant 0 : index
    %c0_44 = arith.constant 0 : index
    %110 = vector.load %arg4[%c2, %c0_43, %c0_44] : memref<5x48x16xf32, #tpu.memory_space<vmem>>, vector<1x48x16xf32>
    %111 = vector.shape_cast %110 : vector<1x48x16xf32> to vector<48x16xf32>
    %112 = vector.extract_strided_slice %81 {offsets = [16, 0], sizes = [16, 240], strides = [1, 1]} : vector<48x240xf32> to vector<16x240xf32>
    %113 = vector.extract_strided_slice %112 {offsets = [0, 0], sizes = [16, 48], strides = [1, 1]} : vector<16x240xf32> to vector<16x48xf32>
    %cst_45 = arith.constant dense<0.000000e+00> : vector<16x16xf32>
    %114 = tpu.matmul %113, %111, %cst_45 {dimension_numbers = #tpu.dot_dimension_numbers<[1], [0], [0], [1], [0, 0, 1, 1], [], []>} : vector<16x48xf32>, vector<48x16xf32>, vector<16x16xf32> -> vector<16x16xf32>
    %115 = vector.extract_strided_slice %112 {offsets = [0, 48], sizes = [16, 48], strides = [1, 1]} : vector<16x240xf32> to vector<16x48xf32>
    %cst_46 = arith.constant dense<0.000000e+00> : vector<16x16xf32>
    %116 = tpu.matmul %115, %111, %cst_46 {dimension_numbers = #tpu.dot_dimension_numbers<[1], [0], [0], [1], [0, 0, 1, 1], [], []>} : vector<16x48xf32>, vector<48x16xf32>, vector<16x16xf32> -> vector<16x16xf32>
    %117 = vector.extract_strided_slice %112 {offsets = [0, 96], sizes = [16, 48], strides = [1, 1]} : vector<16x240xf32> to vector<16x48xf32>
    %cst_47 = arith.constant dense<0.000000e+00> : vector<16x16xf32>
    %118 = tpu.matmul %117, %111, %cst_47 {dimension_numbers = #tpu.dot_dimension_numbers<[1], [0], [0], [1], [0, 0, 1, 1], [], []>} : vector<16x48xf32>, vector<48x16xf32>, vector<16x16xf32> -> vector<16x16xf32>
    %119 = vector.extract_strided_slice %112 {offsets = [0, 144], sizes = [16, 48], strides = [1, 1]} : vector<16x240xf32> to vector<16x48xf32>
    %cst_48 = arith.constant dense<0.000000e+00> : vector<16x16xf32>
    %120 = tpu.matmul %119, %111, %cst_48 {dimension_numbers = #tpu.dot_dimension_numbers<[1], [0], [0], [1], [0, 0, 1, 1], [], []>} : vector<16x48xf32>, vector<48x16xf32>, vector<16x16xf32> -> vector<16x16xf32>
    %121 = vector.extract_strided_slice %112 {offsets = [0, 192], sizes = [16, 48], strides = [1, 1]} : vector<16x240xf32> to vector<16x48xf32>
    %cst_49 = arith.constant dense<0.000000e+00> : vector<16x16xf32>
    %122 = tpu.matmul %121, %111, %cst_49 {dimension_numbers = #tpu.dot_dimension_numbers<[1], [0], [0], [1], [0, 0, 1, 1], [], []>} : vector<16x48xf32>, vector<48x16xf32>, vector<16x16xf32> -> vector<16x16xf32>
    %123 = arith.mulf %114, %114 : vector<16x16xf32>
    %124 = arith.mulf %116, %116 : vector<16x16xf32>
    %125 = arith.mulf %114, %116 : vector<16x16xf32>
    %126 = arith.subf %118, %123 : vector<16x16xf32>
    %127 = arith.subf %120, %124 : vector<16x16xf32>
    %128 = arith.subf %122, %125 : vector<16x16xf32>
    %cst_50 = arith.constant 2.000000e+00 : f32
    %129 = vector.broadcast %cst_50 : f32 to vector<16x16xf32>
    %130 = arith.mulf %129, %128 : vector<16x16xf32>
    %cst_51 = arith.constant 8.99999984E-4 : f32
    %131 = vector.broadcast %cst_51 : f32 to vector<16x16xf32>
    %132 = arith.addf %130, %131 : vector<16x16xf32>
    %133 = arith.addf %126, %127 : vector<16x16xf32>
    %cst_52 = arith.constant 8.99999984E-4 : f32
    %134 = vector.broadcast %cst_52 : f32 to vector<16x16xf32>
    %135 = arith.addf %133, %134 : vector<16x16xf32>
    %136 = arith.divf %132, %135 : vector<16x16xf32>
    %137 = arith.mulf %136, %136 : vector<16x16xf32>
    %138 = arith.mulf %137, %136 : vector<16x16xf32>
    %139 = arith.mulf %109, %138 : vector<16x16xf32>
    %c3 = arith.constant 3 : index
    %c0_53 = arith.constant 0 : index
    %c0_54 = arith.constant 0 : index
    %140 = vector.load %arg4[%c3, %c0_53, %c0_54] : memref<5x48x16xf32, #tpu.memory_space<vmem>>, vector<1x48x16xf32>
    %141 = vector.shape_cast %140 : vector<1x48x16xf32> to vector<48x16xf32>
    %142 = vector.extract_strided_slice %81 {offsets = [32, 0], sizes = [16, 240], strides = [1, 1]} : vector<48x240xf32> to vector<16x240xf32>
    %143 = vector.extract_strided_slice %142 {offsets = [0, 0], sizes = [16, 48], strides = [1, 1]} : vector<16x240xf32> to vector<16x48xf32>
    %cst_55 = arith.constant dense<0.000000e+00> : vector<16x16xf32>
    %144 = tpu.matmul %143, %141, %cst_55 {dimension_numbers = #tpu.dot_dimension_numbers<[1], [0], [0], [1], [0, 0, 1, 1], [], []>} : vector<16x48xf32>, vector<48x16xf32>, vector<16x16xf32> -> vector<16x16xf32>
    %145 = vector.extract_strided_slice %142 {offsets = [0, 48], sizes = [16, 48], strides = [1, 1]} : vector<16x240xf32> to vector<16x48xf32>
    %cst_56 = arith.constant dense<0.000000e+00> : vector<16x16xf32>
    %146 = tpu.matmul %145, %141, %cst_56 {dimension_numbers = #tpu.dot_dimension_numbers<[1], [0], [0], [1], [0, 0, 1, 1], [], []>} : vector<16x48xf32>, vector<48x16xf32>, vector<16x16xf32> -> vector<16x16xf32>
    %147 = vector.extract_strided_slice %142 {offsets = [0, 96], sizes = [16, 48], strides = [1, 1]} : vector<16x240xf32> to vector<16x48xf32>
    %cst_57 = arith.constant dense<0.000000e+00> : vector<16x16xf32>
    %148 = tpu.matmul %147, %141, %cst_57 {dimension_numbers = #tpu.dot_dimension_numbers<[1], [0], [0], [1], [0, 0, 1, 1], [], []>} : vector<16x48xf32>, vector<48x16xf32>, vector<16x16xf32> -> vector<16x16xf32>
    %149 = vector.extract_strided_slice %142 {offsets = [0, 144], sizes = [16, 48], strides = [1, 1]} : vector<16x240xf32> to vector<16x48xf32>
    %cst_58 = arith.constant dense<0.000000e+00> : vector<16x16xf32>
    %150 = tpu.matmul %149, %141, %cst_58 {dimension_numbers = #tpu.dot_dimension_numbers<[1], [0], [0], [1], [0, 0, 1, 1], [], []>} : vector<16x48xf32>, vector<48x16xf32>, vector<16x16xf32> -> vector<16x16xf32>
    %151 = vector.extract_strided_slice %142 {offsets = [0, 192], sizes = [16, 48], strides = [1, 1]} : vector<16x240xf32> to vector<16x48xf32>
    %cst_59 = arith.constant dense<0.000000e+00> : vector<16x16xf32>
    %152 = tpu.matmul %151, %141, %cst_59 {dimension_numbers = #tpu.dot_dimension_numbers<[1], [0], [0], [1], [0, 0, 1, 1], [], []>} : vector<16x48xf32>, vector<48x16xf32>, vector<16x16xf32> -> vector<16x16xf32>
    %153 = arith.mulf %144, %144 : vector<16x16xf32>
    %154 = arith.mulf %146, %146 : vector<16x16xf32>
    %155 = arith.mulf %144, %146 : vector<16x16xf32>
    %156 = arith.subf %148, %153 : vector<16x16xf32>
    %157 = arith.subf %150, %154 : vector<16x16xf32>
    %158 = arith.subf %152, %155 : vector<16x16xf32>
    %cst_60 = arith.constant 2.000000e+00 : f32
    %159 = vector.broadcast %cst_60 : f32 to vector<16x16xf32>
    %160 = arith.mulf %159, %158 : vector<16x16xf32>
    %cst_61 = arith.constant 8.99999984E-4 : f32
    %161 = vector.broadcast %cst_61 : f32 to vector<16x16xf32>
    %162 = arith.addf %160, %161 : vector<16x16xf32>
    %163 = arith.addf %156, %157 : vector<16x16xf32>
    %cst_62 = arith.constant 8.99999984E-4 : f32
    %164 = vector.broadcast %cst_62 : f32 to vector<16x16xf32>
    %165 = arith.addf %163, %164 : vector<16x16xf32>
    %166 = arith.divf %162, %165 : vector<16x16xf32>
    %167 = arith.mulf %139, %166 : vector<16x16xf32>
    %168 = vector.extract_strided_slice %1 {offsets = [2, 0, 0], sizes = [1, 48, 48], strides = [1, 1, 1]} : vector<3x48x48xf32> to vector<1x48x48xf32>
    %169 = vector.shape_cast %168 : vector<1x48x48xf32> to vector<48x48xf32>
    %170 = vector.extract_strided_slice %3 {offsets = [2, 0, 0], sizes = [1, 48, 48], strides = [1, 1, 1]} : vector<3x48x48xf32> to vector<1x48x48xf32>
    %171 = vector.shape_cast %170 : vector<1x48x48xf32> to vector<48x48xf32>
    %172 = arith.mulf %169, %169 : vector<48x48xf32>
    %173 = arith.mulf %171, %171 : vector<48x48xf32>
    %174 = arith.mulf %169, %171 : vector<48x48xf32>
    %175 = tpu.concatenate %169, %171, %172, %173, %174 in 1 : vector<48x48xf32>, vector<48x48xf32>, vector<48x48xf32>, vector<48x48xf32>, vector<48x48xf32> -> vector<48x240xf32>
    %c48 = arith.constant 48 : index
    %c0_63 = arith.constant 0 : index
    %176 = vector.load %arg3[%c48, %c0_63] : memref<80x48xf32, #tpu.memory_space<vmem>>, vector<32x48xf32>
    %cst_64 = arith.constant dense<0.000000e+00> : vector<32x240xf32>
    %177 = tpu.matmul %176, %175, %cst_64 {dimension_numbers = #tpu.dot_dimension_numbers<[1], [0], [0], [1], [0, 0, 1, 1], [], []>} : vector<32x48xf32>, vector<48x240xf32>, vector<32x240xf32> -> vector<32x240xf32>
    %c3_65 = arith.constant 3 : index
    %c0_66 = arith.constant 0 : index
    %c0_67 = arith.constant 0 : index
    %178 = vector.load %arg4[%c3_65, %c0_66, %c0_67] : memref<5x48x16xf32, #tpu.memory_space<vmem>>, vector<1x48x16xf32>
    %179 = vector.shape_cast %178 : vector<1x48x16xf32> to vector<48x16xf32>
    %180 = vector.extract_strided_slice %177 {offsets = [0, 0], sizes = [16, 240], strides = [1, 1]} : vector<32x240xf32> to vector<16x240xf32>
    %181 = vector.extract_strided_slice %180 {offsets = [0, 0], sizes = [16, 48], strides = [1, 1]} : vector<16x240xf32> to vector<16x48xf32>
    %cst_68 = arith.constant dense<0.000000e+00> : vector<16x16xf32>
    %182 = tpu.matmul %181, %179, %cst_68 {dimension_numbers = #tpu.dot_dimension_numbers<[1], [0], [0], [1], [0, 0, 1, 1], [], []>} : vector<16x48xf32>, vector<48x16xf32>, vector<16x16xf32> -> vector<16x16xf32>
    %183 = vector.extract_strided_slice %180 {offsets = [0, 48], sizes = [16, 48], strides = [1, 1]} : vector<16x240xf32> to vector<16x48xf32>
    %cst_69 = arith.constant dense<0.000000e+00> : vector<16x16xf32>
    %184 = tpu.matmul %183, %179, %cst_69 {dimension_numbers = #tpu.dot_dimension_numbers<[1], [0], [0], [1], [0, 0, 1, 1], [], []>} : vector<16x48xf32>, vector<48x16xf32>, vector<16x16xf32> -> vector<16x16xf32>
    %185 = vector.extract_strided_slice %180 {offsets = [0, 96], sizes = [16, 48], strides = [1, 1]} : vector<16x240xf32> to vector<16x48xf32>
    %cst_70 = arith.constant dense<0.000000e+00> : vector<16x16xf32>
    %186 = tpu.matmul %185, %179, %cst_70 {dimension_numbers = #tpu.dot_dimension_numbers<[1], [0], [0], [1], [0, 0, 1, 1], [], []>} : vector<16x48xf32>, vector<48x16xf32>, vector<16x16xf32> -> vector<16x16xf32>
    %187 = vector.extract_strided_slice %180 {offsets = [0, 144], sizes = [16, 48], strides = [1, 1]} : vector<16x240xf32> to vector<16x48xf32>
    %cst_71 = arith.constant dense<0.000000e+00> : vector<16x16xf32>
    %188 = tpu.matmul %187, %179, %cst_71 {dimension_numbers = #tpu.dot_dimension_numbers<[1], [0], [0], [1], [0, 0, 1, 1], [], []>} : vector<16x48xf32>, vector<48x16xf32>, vector<16x16xf32> -> vector<16x16xf32>
    %189 = vector.extract_strided_slice %180 {offsets = [0, 192], sizes = [16, 48], strides = [1, 1]} : vector<16x240xf32> to vector<16x48xf32>
    %cst_72 = arith.constant dense<0.000000e+00> : vector<16x16xf32>
    %190 = tpu.matmul %189, %179, %cst_72 {dimension_numbers = #tpu.dot_dimension_numbers<[1], [0], [0], [1], [0, 0, 1, 1], [], []>} : vector<16x48xf32>, vector<48x16xf32>, vector<16x16xf32> -> vector<16x16xf32>
    %191 = arith.mulf %182, %182 : vector<16x16xf32>
    %192 = arith.mulf %184, %184 : vector<16x16xf32>
    %193 = arith.mulf %182, %184 : vector<16x16xf32>
    %194 = arith.subf %186, %191 : vector<16x16xf32>
    %195 = arith.subf %188, %192 : vector<16x16xf32>
    %196 = arith.subf %190, %193 : vector<16x16xf32>
    %cst_73 = arith.constant 2.000000e+00 : f32
    %197 = vector.broadcast %cst_73 : f32 to vector<16x16xf32>
    %198 = arith.mulf %197, %196 : vector<16x16xf32>
    %cst_74 = arith.constant 8.99999984E-4 : f32
    %199 = vector.broadcast %cst_74 : f32 to vector<16x16xf32>
    %200 = arith.addf %198, %199 : vector<16x16xf32>
    %201 = arith.addf %194, %195 : vector<16x16xf32>
    %cst_75 = arith.constant 8.99999984E-4 : f32
    %202 = vector.broadcast %cst_75 : f32 to vector<16x16xf32>
    %203 = arith.addf %201, %202 : vector<16x16xf32>
    %204 = arith.divf %200, %203 : vector<16x16xf32>
    %205 = arith.mulf %204, %204 : vector<16x16xf32>
    %206 = arith.mulf %167, %205 : vector<16x16xf32>
    %c4 = arith.constant 4 : index
    %c0_76 = arith.constant 0 : index
    %c0_77 = arith.constant 0 : index
    %207 = vector.load %arg4[%c4, %c0_76, %c0_77] : memref<5x48x16xf32, #tpu.memory_space<vmem>>, vector<1x48x16xf32>
    %208 = vector.shape_cast %207 : vector<1x48x16xf32> to vector<48x16xf32>
    %209 = vector.extract_strided_slice %177 {offsets = [16, 0], sizes = [16, 240], strides = [1, 1]} : vector<32x240xf32> to vector<16x240xf32>
    %210 = vector.extract_strided_slice %209 {offsets = [0, 0], sizes = [16, 48], strides = [1, 1]} : vector<16x240xf32> to vector<16x48xf32>
    %cst_78 = arith.constant dense<0.000000e+00> : vector<16x16xf32>
    %211 = tpu.matmul %210, %208, %cst_78 {dimension_numbers = #tpu.dot_dimension_numbers<[1], [0], [0], [1], [0, 0, 1, 1], [], []>} : vector<16x48xf32>, vector<48x16xf32>, vector<16x16xf32> -> vector<16x16xf32>
    %212 = vector.extract_strided_slice %209 {offsets = [0, 48], sizes = [16, 48], strides = [1, 1]} : vector<16x240xf32> to vector<16x48xf32>
    %cst_79 = arith.constant dense<0.000000e+00> : vector<16x16xf32>
    %213 = tpu.matmul %212, %208, %cst_79 {dimension_numbers = #tpu.dot_dimension_numbers<[1], [0], [0], [1], [0, 0, 1, 1], [], []>} : vector<16x48xf32>, vector<48x16xf32>, vector<16x16xf32> -> vector<16x16xf32>
    %214 = vector.extract_strided_slice %209 {offsets = [0, 96], sizes = [16, 48], strides = [1, 1]} : vector<16x240xf32> to vector<16x48xf32>
    %cst_80 = arith.constant dense<0.000000e+00> : vector<16x16xf32>
    %215 = tpu.matmul %214, %208, %cst_80 {dimension_numbers = #tpu.dot_dimension_numbers<[1], [0], [0], [1], [0, 0, 1, 1], [], []>} : vector<16x48xf32>, vector<48x16xf32>, vector<16x16xf32> -> vector<16x16xf32>
    %216 = vector.extract_strided_slice %209 {offsets = [0, 144], sizes = [16, 48], strides = [1, 1]} : vector<16x240xf32> to vector<16x48xf32>
    %cst_81 = arith.constant dense<0.000000e+00> : vector<16x16xf32>
    %217 = tpu.matmul %216, %208, %cst_81 {dimension_numbers = #tpu.dot_dimension_numbers<[1], [0], [0], [1], [0, 0, 1, 1], [], []>} : vector<16x48xf32>, vector<48x16xf32>, vector<16x16xf32> -> vector<16x16xf32>
    %218 = vector.extract_strided_slice %209 {offsets = [0, 192], sizes = [16, 48], strides = [1, 1]} : vector<16x240xf32> to vector<16x48xf32>
    %cst_82 = arith.constant dense<0.000000e+00> : vector<16x16xf32>
    %219 = tpu.matmul %218, %208, %cst_82 {dimension_numbers = #tpu.dot_dimension_numbers<[1], [0], [0], [1], [0, 0, 1, 1], [], []>} : vector<16x48xf32>, vector<48x16xf32>, vector<16x16xf32> -> vector<16x16xf32>
    %220 = arith.mulf %211, %211 : vector<16x16xf32>
    %221 = arith.mulf %213, %213 : vector<16x16xf32>
    %222 = arith.mulf %211, %213 : vector<16x16xf32>
    %223 = arith.subf %215, %220 : vector<16x16xf32>
    %224 = arith.subf %217, %221 : vector<16x16xf32>
    %225 = arith.subf %219, %222 : vector<16x16xf32>
    %cst_83 = arith.constant 2.000000e+00 : f32
    %226 = vector.broadcast %cst_83 : f32 to vector<16x16xf32>
    %227 = arith.mulf %226, %225 : vector<16x16xf32>
    %cst_84 = arith.constant 8.99999984E-4 : f32
    %228 = vector.broadcast %cst_84 : f32 to vector<16x16xf32>
    %229 = arith.addf %227, %228 : vector<16x16xf32>
    %230 = arith.addf %223, %224 : vector<16x16xf32>
    %cst_85 = arith.constant 8.99999984E-4 : f32
    %231 = vector.broadcast %cst_85 : f32 to vector<16x16xf32>
    %232 = arith.addf %230, %231 : vector<16x16xf32>
    %233 = arith.divf %229, %232 : vector<16x16xf32>
    %234 = arith.mulf %233, %233 : vector<16x16xf32>
    %235 = arith.mulf %234, %233 : vector<16x16xf32>
    %236 = arith.mulf %206, %235 : vector<16x16xf32>
    %cst_86 = arith.constant 2.000000e+00 : f32
    %237 = vector.broadcast %cst_86 : f32 to vector<16x16xf32>
    %238 = arith.mulf %237, %222 : vector<16x16xf32>
    %cst_87 = arith.constant 9.99999974E-5 : f32
    %239 = vector.broadcast %cst_87 : f32 to vector<16x16xf32>
    %240 = arith.addf %238, %239 : vector<16x16xf32>
    %241 = arith.addf %220, %221 : vector<16x16xf32>
    %cst_88 = arith.constant 9.99999974E-5 : f32
    %242 = vector.broadcast %cst_88 : f32 to vector<16x16xf32>
    %243 = arith.addf %241, %242 : vector<16x16xf32>
    %244 = arith.divf %240, %243 : vector<16x16xf32>
    %245 = arith.mulf %244, %244 : vector<16x16xf32>
    %246 = arith.mulf %245, %244 : vector<16x16xf32>
    %247 = arith.mulf %246, %236 : vector<16x16xf32>
    %cst_89 = arith.constant 1.000000e+00 : f32
    %248 = vector.broadcast %cst_89 : f32 to vector<16x16xf32>
    %249 = arith.subf %248, %247 : vector<16x16xf32>
    %250 = vector.extract_strided_slice %1 {offsets = [0, 0, 0], sizes = [1, 48, 48], strides = [1, 1, 1]} : vector<3x48x48xf32> to vector<1x48x48xf32>
    %251 = vector.shape_cast %250 : vector<1x48x48xf32> to vector<48x48xf32>
    %252 = vector.extract_strided_slice %3 {offsets = [0, 0, 0], sizes = [1, 48, 48], strides = [1, 1, 1]} : vector<3x48x48xf32> to vector<1x48x48xf32>
    %253 = vector.shape_cast %252 : vector<1x48x48xf32> to vector<48x48xf32>
    %254 = arith.subf %251, %253 : vector<48x48xf32>
    %255 = math.absf %254 : vector<48x48xf32>
    %256 = vector.extract_strided_slice %1 {offsets = [1, 0, 0], sizes = [1, 48, 48], strides = [1, 1, 1]} : vector<3x48x48xf32> to vector<1x48x48xf32>
    %257 = vector.shape_cast %256 : vector<1x48x48xf32> to vector<48x48xf32>
    %258 = vector.extract_strided_slice %3 {offsets = [1, 0, 0], sizes = [1, 48, 48], strides = [1, 1, 1]} : vector<3x48x48xf32> to vector<1x48x48xf32>
    %259 = vector.shape_cast %258 : vector<1x48x48xf32> to vector<48x48xf32>
    %260 = arith.subf %257, %259 : vector<48x48xf32>
    %261 = math.absf %260 : vector<48x48xf32>
    %262 = arith.addf %255, %261 : vector<48x48xf32>
    %263 = vector.extract_strided_slice %1 {offsets = [2, 0, 0], sizes = [1, 48, 48], strides = [1, 1, 1]} : vector<3x48x48xf32> to vector<1x48x48xf32>
    %264 = vector.shape_cast %263 : vector<1x48x48xf32> to vector<48x48xf32>
    %265 = vector.extract_strided_slice %3 {offsets = [2, 0, 0], sizes = [1, 48, 48], strides = [1, 1, 1]} : vector<3x48x48xf32> to vector<1x48x48xf32>
    %266 = vector.shape_cast %265 : vector<1x48x48xf32> to vector<48x48xf32>
    %267 = arith.subf %264, %266 : vector<48x48xf32>
    %268 = math.absf %267 : vector<48x48xf32>
    %269 = arith.addf %262, %268 : vector<48x48xf32>
    %c64 = arith.constant 64 : index
    %c0_90 = arith.constant 0 : index
    %270 = vector.load %arg3[%c64, %c0_90] : memref<80x48xf32, #tpu.memory_space<vmem>>, vector<16x48xf32>
    %cst_91 = arith.constant dense<0.000000e+00> : vector<16x48xf32>
    %271 = tpu.matmul %270, %269, %cst_91 {dimension_numbers = #tpu.dot_dimension_numbers<[1], [0], [0], [1], [0, 0, 1, 1], [], []>} : vector<16x48xf32>, vector<48x48xf32>, vector<16x48xf32> -> vector<16x48xf32>
    %c4_92 = arith.constant 4 : index
    %c0_93 = arith.constant 0 : index
    %c0_94 = arith.constant 0 : index
    %272 = vector.load %arg4[%c4_92, %c0_93, %c0_94] : memref<5x48x16xf32, #tpu.memory_space<vmem>>, vector<1x48x16xf32>
    %273 = vector.shape_cast %272 : vector<1x48x16xf32> to vector<48x16xf32>
    %cst_95 = arith.constant dense<0.000000e+00> : vector<16x16xf32>
    %274 = tpu.matmul %271, %273, %cst_95 {dimension_numbers = #tpu.dot_dimension_numbers<[1], [0], [0], [1], [0, 0, 1, 1], [], []>} : vector<16x48xf32>, vector<48x16xf32>, vector<16x16xf32> -> vector<16x16xf32>
    %cst_96 = arith.constant 0.333333343 : f32
    %275 = vector.broadcast %cst_96 : f32 to vector<16x16xf32>
    %276 = arith.mulf %274, %275 : vector<16x16xf32>
    %cst_97 = arith.constant 2.500000e-02 : f32
    %277 = vector.broadcast %cst_97 : f32 to vector<16x16xf32>
    %278 = arith.mulf %277, %249 : vector<16x16xf32>
    %cst_98 = arith.constant 9.750000e-01 : f32
    %279 = vector.broadcast %cst_98 : f32 to vector<16x16xf32>
    %280 = arith.mulf %279, %276 : vector<16x16xf32>
    %cst_99 = arith.constant 1.000000e+00 : f32
    %281 = vector.broadcast %cst_99 : f32 to vector<16x16xf32>
    %282 = arith.mulf %280, %281 : vector<16x16xf32>
    %283 = arith.addf %278, %282 : vector<16x16xf32>
    %284 = vector.shape_cast %283 : vector<16x16xf32> to vector<1x16x16xf32>
    %cst_100 = arith.constant dense<0.000000e+00> : vector<1xf32>
    %285 = vector.multi_reduction <add>, %284, %cst_100 [1, 2] : vector<1x16x16xf32> to vector<1xf32>
    %286 = vector.shape_cast %285 : vector<1xf32> to vector<1x1x1xf32>
    %287 = vector.extract %286[0, 0, 0] : f32 from vector<1x1x1xf32>
    %288 = vector.broadcast %287 : f32 to vector<1x1xf32>
    %cst_101 = arith.constant 2.000000e+02 : f32
    %289 = vector.broadcast %cst_101 : f32 to vector<1x1xf32>
    %290 = arith.mulf %289, %288 : vector<1x1xf32>
    %c0_102 = arith.constant 0 : index
    %c0_103 = arith.constant 0 : index
    %c0_104 = arith.constant 0 : index
    %291 = vector.load %arg5[%c0_102, %c0_103, %c0_104] : memref<1x1x1xf32, #tpu.memory_space<vmem>>, vector<1x1x1xf32>
    %292 = vector.shape_cast %291 : vector<1x1x1xf32> to vector<1x1xf32>
    %293 = vector.shape_cast %290 : vector<1x1xf32> to vector<1x1x1xf32>
    tpu.vector_store %arg5[%c0_102, %c0_103, %c0_104], %293 {strides = array<i32>} : memref<1x1x1xf32, #tpu.memory_space<vmem>>, vector<1x1x1xf32>,
    return
  }
  func.func @transform_0(%arg0: i32) -> (i32, i32, i32, i32) {
    %c0_i32 = arith.constant 0 : i32
    %c0_i32_0 = arith.constant 0 : i32
    %c0_i32_1 = arith.constant 0 : i32
    %c0_i32_2 = arith.constant 0 : i32
    return %arg0, %c0_i32, %c0_i32_0, %c0_i32_1 : i32, i32, i32, i32
  }
  func.func @transform_1(%arg0: i32) -> (i32, i32, i32, i32) {
    %c0_i32 = arith.constant 0 : i32
    %c0_i32_0 = arith.constant 0 : i32
    %c0_i32_1 = arith.constant 0 : i32
    %c0_i32_2 = arith.constant 0 : i32
    return %arg0, %c0_i32, %c0_i32_0, %c0_i32_1 : i32, i32, i32, i32
  }
  func.func @transform_2(%arg0: i32) -> (i32, i32) {
    %c0_i32 = arith.constant 0 : i32
    %c0_i32_0 = arith.constant 0 : i32
    %c0_i32_1 = arith.constant 0 : i32
    return %c0_i32, %c0_i32_0 : i32, i32
  }
  func.func @transform_3(%arg0: i32) -> (i32, i32, i32) {
    %c0_i32 = arith.constant 0 : i32
    %c0_i32_0 = arith.constant 0 : i32
    %c0_i32_1 = arith.constant 0 : i32
    %c0_i32_2 = arith.constant 0 : i32
    return %c0_i32, %c0_i32_0, %c0_i32_1 : i32, i32, i32
  }
  func.func @transform_4(%arg0: i32) -> (i32, i32, i32) {
    %c0_i32 = arith.constant 0 : i32
    %c0_i32_0 = arith.constant 0 : i32
    %c0_i32_1 = arith.constant 0 : i32
    return %arg0, %c0_i32, %c0_i32_0 : i32, i32, i32
  }
}

</mosaic_0001>

<bundles_post_ra>
// kernel: tpu_custom_call.1
= control target key start
LH: loop header
LB: loop body
LE: loop exit
PB: predicated region body
PF: predicated region fallthrough
CT: control target
= control target key end

     0   :  { %9 = vsyncpa [#allocation3], 0  ;;  %s7711_s0 = inlined_call_operand.vmem [shape: f32[2,3,48,48], index: 0, kind: input, shape index: {}]   ;;  %s7712_s1 = inlined_call_operand.hbm [shape: f32[2,3,48,48], index: 1, kind: input, shape index: {}]   ;;  %s7713_s2 = inlined_call_operand.vmem [shape: f32[80,48], index: 2, kind: input, shape index: {}]   ;;  %s7714_s3 = inlined_call_operand.vmem [shape: f32[5,48,16], index: 3, kind: input, shape index: {}]   ;;  %s7715_s4 = inlined_call_operand.vmem [shape: f32[2,1,1], index: 4, kind: output, shape index: {}]  }
   0x1   :  { %11 = vsyncpa [#allocation3 + $0x1], 0  ;;  %s6364_s15 = smov 0   ;;  %s6366_s16 = smov 0  }
   0x2   :  { %s6368_s17 = smov 0   ;;  %s6370_s18 = smov 0  }
   0x3 LB: > { %s6383_s19 = sadd.s32 4294967295, %s6326_s18   ;;  %s6386_s20 = sadd.s32 1, %s6326_s18   ;;  %s6326_s18 = sphi %s6370_s18, %s7770_s18   ;;  %s6322_s17 = sphi %s6368_s17, %s7769_s17   ;;  %s6318_s16 = sphi %s6366_s16, %s7768_s16   ;;  %s6314_s15 = sphi %s6364_s15, %s7767_s15  }
   0x4   : > { %s47_s21 = ssub.s32 %s6326_s18, %s6386_s20  ;;  %s50_s22 = sadd.s32 1, %s6322_s17 }
   0x5   : > { %p48_p0 = scmp.eq.s32.totalorder %s47_s21, 0  ;;  %p57_p1 = scmp.ne.s32.totalorder %s6322_s17, %s6318_s16 }
   0x6   : > { %p58_p2 = scmp.eq.s32.totalorder %s6326_s18, 0  ;;  %p63_p3 = scmp.ne.s32.totalorder %s6318_s16, %s6314_s15 }
   0x7   : > { %s6396_s23 = scalar_select %p48_p0, %s6322_s17, %s50_s22  }
   0x8   : > { %p59_p4 = por %p58_p2, %p57_p1  ;;  %p64_p5 = scmp.eq.s32.totalorder %s6383_s19, 0 }
   0x9   : > { %p5983_p6 = scmp.lt.s32.totalorder %s6326_s18, 2  ;;  %s169_s25 = sand.u32 1, %s6322_s17  }
   0xa   : > { %p6400_p7 = por %p64_p5, %p63_p3  ;;  %s5971_s26 = smul.u32 144, %s169_s25 }
   0xb   : > { %s5972_s27 = smul.u32 2304, %s6326_s18  ;;  %p6406_p8 = pnand %p5983_p6, %p59_p4 }
   0xc   : > { %s173_s6 = scalar_lea.vmem [#allocation2], %s5971_s26  ;;  %s6418_s8 = scalar_lea.sflag [#allocation3], %s169_s25 }
   0xd   : > { %s6413_s5 = scalar_lea.hbm %s7712_s1, %s5972_s27  ;;  %s180_s7 = sshll.u32 %s173_s6, 4  ;;  %s6415_s7 = int_to_ptr.vmem [resolvable:$true] %s180_s7 }
   0xe   : > { %s6262_s9 = scalar_lea.hbm %s6413_s5, 2304  ;;  %p6264_p11 = pneg %p6406_p8 }
   0xf   : > { %p6263_p10 = scmp.ne.s32.totalorder %s6413_s5, %s6262_s9  ;;  %s6267_s12 = scalar_lea.hbm %s7712_s1, 4608 }
  0x10   : > { %p6268_p0 = scmp.lt.u32.totalorder %s6413_s5, %s7712_s1  ;;  %p6269_p1 = scmp.lt.u32.totalorder %s6267_s12, %s6262_s9 }
  0x11   : > { %p6265_p12 = pnand %p6264_p11, %p6263_p10  ;;  %p6271_p3 = scmp.lt.u32.totalorder %s6262_s9, %s6413_s5 }
  0x12   : > { %p6270_p2 = por %p6269_p1, %p6268_p0 }
  0x13   : > { %p6266_p13 = pneg %p6265_p12 }
  0x14   : > { %p6272_p4 = por %p6271_p3, %p6270_p2 }
  0x16   : > { %p6273_p5 = pnand %p6272_p4, %p6266_p13 }
  0x18   : > { %6276 = shalt.err (!%p6273_p5)
}
  0x19   : > { %s6277_s15 = scalar_lea.vmem %s6415_s7, 2304  ;;  %s6328_s21 = smov [#allocation2]  }
  0x1a   : > { %p6278_p6 = scmp.ne.s32.totalorder %s6415_s7, %s6277_s15  ;;  %s6282_s22 = sshll.u32 %s6328_s21, 4  ;;  %s6283_s22 = int_to_ptr.vmem [resolvable:$false] %s6282_s22 }
  0x1b   : > { %s6284_s25 = scalar_lea.vmem %s6283_s22, 4608  ;;  %p6285_p9 = scmp.lt.s32.totalorder %s6415_s7, %s6283_s22 }
  0x1c   : > { %p6280_p10 = pnand %p6278_p6, %p6264_p11  ;;  %p6286_p0 = scmp.lt.s32.totalorder %s6284_s25, %s6277_s15 }
  0x1e   : > { %p6281_p12 = pneg %p6280_p10  ;;  %p6287_p1 = por %p6286_p0, %p6285_p9 }
  0x20   : > { %p6288_p2 = pnand %p6287_p1, %p6281_p12 }
  0x22   : > { %6291 = shalt.err (!%p6288_p2)
}
  0x23   : > { %s6329_s26 = smov 128   ;;  %s6330_s27 = smov 8  }
  0x24   : > { %5982 = dma.hbm_to_vmem [thread:$0]  (!%p6406_p8), %s6413_s5, 2304, %s6415_s7, %s6418_s8, %s6329_s26, %s6329_s26, %s6330_s27  }
  0x25   : > { %p188_p11 = scmp.lt.s32.totalorder %s6326_s18, 3  ;;  %p7733_p13 = scmp.ge.s32.totalorder %s6326_s18, 1 }
  0x27   : > { %p189_p3 = pnand %p7733_p13, %p188_p11 }
  0x29   : > { %192 = sbr.rel (%p189_p3) target bundleno = 2031 (0x7ef), region = 36 }
  0x30   : > { %s194_s29 = sand.u32 1, %s6318_s16  }
  0x31   : > { %s5973_s30 = smul.u32 144, %s194_s29  ;;  %s195_s6 = scalar_lea.sflag [#allocation3], %s194_s29 }
  0x33   : > { %s6450_s9 = scalar_lea.vmem [#allocation2], %s5973_s30 }
  0x34   : > { %6309 = dma.done.wait (%p6400_p7), %s195_s6, 2304  }
  0x35   : > { %6311 = vsyncadd (%p6400_p7), %s195_s6, 4294964992  ;;  %p226_p8 = scmp.lt.s32.totalorder %s6383_s19, 1  ;;  %v252_v0 = vld [vmem:[%s6450_s9] sm:$0xff]  ;;  %v253_v1 = vld [vmem:[%s6450_s9 + $0x8] sm:$0xff]  ;;  %s6331_s24 = smov 48   ;;  %v7716_v41 = vmov 0.0  }
  0x36   : > { %v6026_v3 = vpack.i.bf16 %v253_v1, %v252_v0  ;;  %v254_v7 = vld [vmem:[%s6450_s9 + $0x10] sm:$0xff]  ;;  %v255_v8 = vld [vmem:[%s6450_s9 + $0x18] sm:$0xff]  ;;  %v276_v11 = vmul.f32 %v252_v0, %v252_v0  ;;  %v277_v12 = vmul.f32 %v253_v1, %v253_v1  ;;  %s6332_s8 = smov 96   ;;  %s6333_s10 = smov 64   ;;  %v256_v25 = vld [vmem:[%s6450_s9 + $0x20] sm:$0xff]  ;;  %492 = vmatprep.mubr.f32.mxu0 %v7716_v41  ;;  %vm384_vm0 = vcmask 392192  }
  0x37   : > { %s7772_s19 = smov (!%p226_p8, %s6383_s19), 1  ;;  %v278_v13 = vmul.f32 %v254_v7, %v254_v7  ;;  %v279_v14 = vmul.f32 %v255_v8, %v255_v8  ;;  %v257_v26 = vld [vmem:[%s6450_s9 + $0x28] sm:$0xff]  ;;  %s6334_s11 = smov 16   ;;  %v280_v29 = vmul.f32 %v256_v25, %v256_v25  ;;  %v6051_v33 = vpack.i.bf16 %v255_v8, %v254_v7  ;;  %v517_v43 = vld [vmem:[%s7714_s3] sm:$0xff]  ;;  %v519_v45 = vld [vmem:[%s7714_s3 + $0x10] sm:$0xff] }
  0x38   : > { %s5974_s18 = smul.u32 144, %s7772_s19  ;;  %6027 = vrot.lane.b32.xlu1 %v6026_v3, %s6331_s24  ;;  %v6036_v19 = vpack.i.bf16 %v277_v12, %v276_v11  ;;  %v281_v30 = vmul.f32 %v257_v26, %v257_v26  ;;  %v6076_v42 = vpack.i.bf16 %v257_v26, %v256_v25  ;;  %v518_v44 = vld [vmem:[%s7714_s3 + $0x8] sm:$0xff]  ;;  %v520_v47 = vld [vmem:[%s7714_s3 + $0x18] sm:$0xff]  ;;  %vm391_vm1 = vcmask 785408   ;;  %s6336_s22 = smov 32  }
  0x39   : > { %v6056_v22 = vpack.i.bf16 %v279_v14, %v278_v13  ;;  %v6530_v46 = vpack.c.bf16 %v518_v44, %v517_v43  ;;  %v6535_v48 = vpack.c.bf16 %v520_v47, %v519_v45  ;;  %vm398_vm2 = vcmask 130048   ;;  %s6337_s25 = smov 80   ;;  %s6338_s26 = smov 112  }
  0x3a   : > { %s6464_s7 = scalar_lea.vmem %s7711_s0, %s5974_s18  ;;  %v6071_v36 = vpack.i.bf16 %v281_v30, %v280_v29  ;;  %vm405_vm3 = vcmask 523264   ;;  %vm697_vm4 = vcmask 261120   ;;  %s233_s27 = scalar_lea.vmem %s7715_s4, %s7772_s19  ;;  %vm4447_vm5 = vcmask 0  }
  0x3b   : > { %v6469_v2 = vld [vmem:[%s6464_s7] sm:$0xff]  ;;  %v6472_v4 = vld [vmem:[%s6464_s7 + $0x8] sm:$0xff]  ;;  %v6484_v15 = vld [vmem:[%s6464_s7 + $0x10] sm:$0xff]  ;;  %5504 = vmatprep.subr.bf16.mxu1 %v6530_v46 }
  0x3c   : > { %v270_v5 = vmul.f32 %v6469_v2, %v6469_v2  ;;  %v282_v6 = vmul.f32 %v252_v0, %v6469_v2  ;;  %v271_v9 = vmul.f32 %v6472_v4, %v6472_v4  ;;  %v283_v10 = vmul.f32 %v253_v1, %v6472_v4  ;;  %v6487_v16 = vld [vmem:[%s6464_s7 + $0x18] sm:$0xff]  ;;  %v6502_v31 = vld [vmem:[%s6464_s7 + $0x20] sm:$0xff]  ;;  %v6505_v32 = vld [vmem:[%s6464_s7 + $0x28] sm:$0xff]  ;;  %5506 = vmatpush3.bf16.msra.mxu1 %v6530_v46 }
  0x3d   : > { %v272_v20 = vmul.f32 %v6484_v15, %v6484_v15  ;;  %v273_v21 = vmul.f32 %v6487_v16, %v6487_v16  ;;  %v284_v23 = vmul.f32 %v254_v7, %v6484_v15  ;;  %v285_v24 = vmul.f32 %v255_v8, %v6487_v16  ;;  %5508 = vmatprep.subr.bf16.mxu1 %v6535_v48 }
  0x3e   : > { %v6031_v17 = vpack.i.bf16 %v271_v9, %v270_v5  ;;  %v6041_v18 = vpack.i.bf16 %v283_v10, %v282_v6  ;;  %v274_v34 = vmul.f32 %v6502_v31, %v6502_v31  ;;  %v275_v35 = vmul.f32 %v6505_v32, %v6505_v32 }
  0x3f   : > { %v6046_v27 = vpack.i.bf16 %v273_v21, %v272_v20  ;;  %v6061_v28 = vpack.i.bf16 %v285_v24, %v284_v23  ;;  %v286_v37 = vmul.f32 %v256_v25, %v6502_v31  ;;  %v287_v38 = vmul.f32 %v257_v26, %v6505_v32 }
  0x40   : > { %6032 = vrot.lane.b32.xlu0 %v6031_v17, %s6332_s8  ;;  %6042 = vrot.lane.b32.xlu1 %v6041_v18, %s6333_s10  ;;  %v6066_v39 = vpack.i.bf16 %v275_v35, %v274_v34 }
  0x41   : > { %v6081_v40 = vpack.i.bf16 %v287_v38, %v286_v37  ;;  %5510 = vmatpush3.bf16.msra.mxu1 %v6535_v48 }
  0x44   : > { %6037 = vrot.lane.b32.xlu0 %v6036_v19, %s6334_s11  ;;  %6057 = vrot.lane.b32.xlu1 %v6056_v22, %s6334_s11 }
  0x48   : > { %6047 = vrot.lane.b32.xlu0 %v6046_v27, %s6332_s8  ;;  %6062 = vrot.lane.b32.xlu1 %v6061_v28, %s6333_s10 }
  0x4c   : > { %6052 = vrot.lane.b32.xlu0 %v6051_v33, %s6331_s24  ;;  %6072 = vrot.lane.b32.xlu1 %v6071_v36, %s6334_s11 }
  0x50   : > { %6067 = vrot.lane.b32.xlu0 %v6066_v39, %s6332_s8  ;;  %6082 = vrot.lane.b32.xlu1 %v6081_v40, %s6333_s10 }
  0x54   : > { %6077 = vrot.lane.b32.xlu0 %v6076_v42, %s6331_s24 }
  0xaa   : > { %v6028_v49 = vpop.permute.xlu1 %6027 }
  0xab   : > { %v6030_v50 = vunpack.i.h.bf16 %v6028_v49  ;;  %v6029_v51 = vunpack.i.l.bf16 %v6028_v49 }
  0xad   : > { %v385_v56 = vsel %vm384_vm0, %v6469_v2, %v6029_v51  ;;  %v386_v57 = vsel %vm384_vm0, %v6472_v4, %v6030_v50 }
  0xb2   : > { %v6033_v52 = vpop.permute.xlu0 %6032  ;;  %v6043_v53 = vpop.permute.xlu1 %6042 }
  0xb3   : > { %v6035_v54 = vunpack.i.h.bf16 %v6033_v52  ;;  %v6034_v55 = vunpack.i.l.bf16 %v6033_v52  ;;  %v6045_v58 = vunpack.i.h.bf16 %v6043_v53  ;;  %v6044_v59 = vunpack.i.l.bf16 %v6043_v53 }
  0xb5   : > { %v392_v0 = vsel %vm391_vm1, %v385_v56, %v6034_v55  ;;  %v393_v1 = vsel %vm391_vm1, %v386_v57, %v6035_v54  ;;  %v412_v56 = vld [vmem:[%s7713_s2] sm:$0xff]  ;;  %v6596_v57 = vld [vmem:[%s7713_s2 + $0x18] sm:$0xff] }
  0xb6   : > { %v6038_v60 = vpop.permute.xlu0 %6037  ;;  %v6058_v63 = vpop.permute.xlu1 %6057  ;;  %v5493_v17 = vpack.c.bf16 %v393_v1, %v392_v0 }
  0xb7   : > { %v6040_v61 = vunpack.i.h.bf16 %v6038_v60  ;;  %v6039_v62 = vunpack.i.l.bf16 %v6038_v60  ;;  %v6060_v3 = vunpack.i.h.bf16 %v6058_v63  ;;  %v6059_v5 = vunpack.i.l.bf16 %v6058_v63 }
  0xb9   : > { %v399_v2 = vsel %vm398_vm2, %v6034_v55, %v6039_v62  ;;  %v400_v6 = vsel %vm398_vm2, %v6035_v54, %v6040_v61  ;;  %v258_v61 = vld [vmem:[%s6450_s9 + $0x30] sm:$0xff]  ;;  %v259_v62 = vld [vmem:[%s6450_s9 + $0x38] sm:$0xff] }
  0xba   : > { %v6048_v4 = vpop.permute.xlu0 %6047  ;;  %v406_v7 = vsel %vm405_vm3, %v399_v2, %v6044_v59  ;;  %v407_v8 = vsel %vm405_vm3, %v400_v6, %v6045_v58  ;;  %v6063_v11 = vpop.permute.xlu1 %6062  ;;  %v521_v58 = vld [vmem:[%s7714_s3 + $0x20] sm:$0xff]  ;;  %v522_v59 = vld [vmem:[%s7714_s3 + $0x28] sm:$0xff]  ;;  %v1435_v1 = vmul.f32 %v258_v61, %v258_v61  ;;  %v6630_v2 = vld [vmem:[%s6464_s7 + $0x38] sm:$0xff] }
  0xbb   : > { %v6050_v9 = vunpack.i.h.bf16 %v6048_v4  ;;  %v6049_v10 = vunpack.i.l.bf16 %v6048_v4  ;;  %v5491_v12 = vpack.c.bf16 %v407_v8, %v406_v7  ;;  %v6065_v13 = vunpack.i.h.bf16 %v6063_v11 }
  0xbc   : > { %v6064_v14 = vunpack.i.l.bf16 %v6063_v11  ;;  %v6606_v60 = vpack.c.bf16 %v522_v59, %v521_v58  ;;  %v1430_v8 = vmul.f32 %v6630_v2, %v6630_v2 }
  0xbd   : > { %5492 = vmatprep.subr.bf16.mxu0 %v5491_v12  ;;  %v401_v18 = vsel %vm398_vm2, %v6049_v10, %v6059_v5  ;;  %v402_v19 = vsel %vm398_vm2, %v6050_v9, %v6060_v3  ;;  %v1436_v3 = vmul.f32 %v259_v62, %v259_v62  ;;  %v6627_v5 = vld [vmem:[%s6464_s7 + $0x30] sm:$0xff] }
  0xbe   : > { %v6053_v20 = vpop.permute.xlu0 %6052  ;;  %5494 = vmatpush1.bf16.msra.mxu0 %v5493_v17  ;;  %v408_v21 = vsel %vm405_vm3, %v401_v18, %v6064_v14  ;;  %v409_v22 = vsel %vm405_vm3, %v402_v19, %v6065_v13  ;;  %v6073_v25 = vpop.permute.xlu1 %6072  ;;  %5512 = vmatprep.subr.bf16.mxu1 %v6606_v60  ;;  %v1429_v7 = vmul.f32 %v6627_v5, %v6627_v5  ;;  %v6659_v17 = vld [vmem:[%s6464_s7 + $0x40] sm:$0xff]  ;;  %v6662_v18 = vld [vmem:[%s6464_s7 + $0x48] sm:$0xff] }
  0xbf   : > { %v6055_v23 = vunpack.i.h.bf16 %v6053_v20  ;;  %v6054_v24 = vunpack.i.l.bf16 %v6053_v20  ;;  %v5495_v26 = vpack.c.bf16 %v409_v22, %v408_v21  ;;  %v6075_v27 = vunpack.i.h.bf16 %v6073_v25  ;;  %5514 = vmatpush3.bf16.msra.mxu1 %v6606_v60 }
  0xc0   : > { %v6074_v28 = vunpack.i.l.bf16 %v6073_v25  ;;  %5516 = vmatprep.subr.bf16.mxu1 %v6530_v46  ;;  %v6086_v11 = vpack.i.bf16 %v1430_v8, %v1429_v7  ;;  %v1441_v13 = vmul.f32 %v258_v61, %v6627_v5  ;;  %v1442_v14 = vmul.f32 %v259_v62, %v6630_v2  ;;  %v260_v25 = vld [vmem:[%s6450_s9 + $0x40] sm:$0xff] }
  0xc1   : > { %5496 = vmatprep.subr.bf16.mxu0 %v5495_v26  ;;  %v387_v29 = vsel %vm384_vm0, %v6484_v15, %v6054_v24  ;;  %v388_v30 = vsel %vm384_vm0, %v6487_v16, %v6055_v23  ;;  %v6096_v20 = vpack.i.bf16 %v259_v62, %v258_v61  ;;  %v1431_v23 = vmul.f32 %v6659_v17, %v6659_v17  ;;  %v261_v26 = vld [vmem:[%s6450_s9 + $0x48] sm:$0xff]  ;;  %v4540_v61 = vld [vmem:[%s7714_s3 + $0x30] sm:$0xff] }
  0xc2   : > { %v6068_v33 = vpop.permute.xlu0 %6067  ;;  %v394_v34 = vsel %vm391_vm1, %v387_v29, %v6049_v10  ;;  %v395_v35 = vsel %vm391_vm1, %v388_v30, %v6050_v9  ;;  %v6083_v38 = vpop.permute.xlu1 %6082  ;;  %v6091_v9 = vpack.i.bf16 %v1436_v3, %v1435_v1  ;;  %v6101_v22 = vpack.i.bf16 %v1442_v14, %v1441_v13  ;;  %v4541_v62 = vld [vmem:[%s7714_s3 + $0x38] sm:$0xff]  ;;  %v4542_v3 = vld [vmem:[%s7714_s3 + $0x40] sm:$0xff] }
  0xc3   : > { %v6070_v36 = vunpack.i.h.bf16 %v6068_v33  ;;  %v6069_v37 = vunpack.i.l.bf16 %v6068_v33  ;;  %v5497_v39 = vpack.c.bf16 %v395_v35, %v394_v34  ;;  %v6085_v40 = vunpack.i.h.bf16 %v6083_v38  ;;  %v262_v35 = vld [vmem:[%s6450_s9 + $0x50] sm:$0xff] }
  0xc4   : > { %v6084_v42 = vunpack.i.l.bf16 %v6083_v38  ;;  %v1432_v24 = vmul.f32 %v6662_v18, %v6662_v18  ;;  %v1443_v33 = vmul.f32 %v260_v25, %v6659_v17  ;;  %v1444_v34 = vmul.f32 %v261_v26, %v6662_v18 }
  0xc5   : > { %5498 = vmatpush1.bf16.msra.mxu0 %v5497_v39  ;;  %v403_v43 = vsel %vm398_vm2, %v6069_v37, %v6074_v28  ;;  %v404_v44 = vsel %vm398_vm2, %v6070_v36, %v6075_v27  ;;  %v1437_v27 = vmul.f32 %v260_v25, %v260_v25  ;;  %v1438_v28 = vmul.f32 %v261_v26, %v261_v26 }
  0xc6   : > { %v6078_v15 = vpop.permute.xlu0 %6077  ;;  %v410_v45 = vsel %vm405_vm3, %v403_v43, %v6084_v42  ;;  %v411_v16 = vsel %vm405_vm3, %v404_v44, %v6085_v40  ;;  %v6106_v29 = vpack.i.bf16 %v1432_v24, %v1431_v23  ;;  %v6121_v38 = vpack.i.bf16 %v1444_v34, %v1443_v33  ;;  %v6691_v42 = vld [vmem:[%s6464_s7 + $0x50] sm:$0xff]  ;;  %v6694_v43 = vld [vmem:[%s6464_s7 + $0x58] sm:$0xff] }
  0xc7   : > { %v6080_v47 = vunpack.i.h.bf16 %v6078_v15  ;;  %v6079_v49 = vunpack.i.l.bf16 %v6078_v15  ;;  %v5499_v50 = vpack.c.bf16 %v411_v16, %v410_v45  ;;  %v6111_v30 = vpack.i.bf16 %v1438_v28, %v1437_v27 }
  0xc8   : > { %v1439_v39 = vmul.f32 %v262_v35, %v262_v35  ;;  %v1433_v44 = vmul.f32 %v6691_v42, %v6691_v42  ;;  %v1434_v15 = vmul.f32 %v6694_v43, %v6694_v43  ;;  %v6746_v1 = vpack.c.bf16 %v4541_v62, %v4540_v61 }
  0xc9   : > { %v390_v51 = vsel %vm384_vm0, %v6505_v32, %v6080_v47  ;;  %v389_v52 = vsel %vm384_vm0, %v6502_v31, %v6079_v49  ;;  %5500 = vmatprep.subr.bf16.mxu0 %v5499_v50  ;;  %v413_v31 = vld [vmem:[%s7713_s2 + $0x8] sm:$0xff]  ;;  %v6587_v32 = vld [vmem:[%s7713_s2 + $0x10] sm:$0xff]  ;;  %v1445_v47 = vmul.f32 %v262_v35, %v6691_v42 }
  0xca   : > { %v396_v53 = vsel %vm391_vm1, %v389_v52, %v6069_v37  ;;  %v397_v54 = vsel %vm391_vm1, %v390_v51, %v6070_v36  ;;  %v263_v36 = vld [vmem:[%s6450_s9 + $0x58] sm:$0xff]  ;;  %v6116_v37 = vpack.i.bf16 %v261_v26, %v260_v25  ;;  %v6126_v16 = vpack.i.bf16 %v1434_v15, %v1433_v44 }
  0xcb   : > { %v5501_v55 = vpack.c.bf16 %v397_v54, %v396_v53  ;;  %v1440_v40 = vmul.f32 %v263_v36, %v263_v36  ;;  %v1446_v49 = vmul.f32 %v263_v36, %v6694_v43  ;;  %v6136_v50 = vpack.i.bf16 %v263_v36, %v262_v35 }
  0xcd   : > { %5502 = vmatpush1.bf16.msra.mxu0 %v5501_v55  ;;  %v6131_v45 = vpack.i.bf16 %v1440_v40, %v1439_v39  ;;  %v6141_v51 = vpack.i.bf16 %v1446_v49, %v1445_v47 }
  0xce   : > { %5528 = vmatprep.subr.bf16.mxu0 %v6530_v46 }
  0xd0   : > { %4526 = vmatmul.mubr.msk.f32.vlgmr.msra.gmra.mrb[0].mxu0 %vm384_vm0, %v412_v56 }
  0xd1   : > { %498 = vmatprep.mubr.f32.mxu0 %v7716_v41  ;;  %5530 = vmatpush3.bf16.msra.mxu0 %v6530_v46 }
  0xd2   : > { %5532 = vmatprep.subr.bf16.mxu0 %v6535_v48 }
  0xd4   : > { %4527 = vmatmul.mubr.msk.f32.gmra.mrb[2].mxu0 %vm384_vm0, %v413_v31 }
  0xd5   : > { %504 = vmatprep.mubr.f32.mxu0 %v7716_v41  ;;  %5534 = vmatpush3.bf16.msra.mxu0 %v6535_v48 }
  0xd6   : > { %5536 = vmatprep.subr.bf16.mxu0 %v6606_v60 }
  0xd8   : > { %4528 = vmatmul.mubr.msk.f32.gmra.mrb[4].mxu0 %vm384_vm0, %v6587_v32 }
  0xd9   : > { %510 = vmatprep.mubr.f32.mxu0 %v7716_v41  ;;  %5538 = vmatpush3.bf16.msra.mxu0 %v6606_v60 }
  0xda   : > { %5552 = vmatprep.subr.bf16.mxu0 %v6530_v46 }
  0xdc   : > { %4529 = vmatmul.mubr.msk.f32.gmra.mrb[6].mxu0 %vm384_vm0, %v6596_v57 }
 0x1a3   : > { %v6616_v63 = vpop.f32.mrb[0].mxu0 }
 0x1a4   : > { %689 = vrot.lane.b32.xlu0 %v6616_v63, %s6336_s22  ;;  %v6620_v0 = vpop.f32.mrb[1].mxu0  ;;  %4948 = vmatprep.mubr.msk.f32.mxu1 %vm384_vm0, %v6616_v63 }
 0x1a5   : > { %691 = vrot.lane.b32.xlu1 %v6620_v0, %s6336_s22 }
 0x1a7   : > { %v6632_v6 = vpop.f32.mrb[2].mxu0 }
 0x1a8   : > { %693 = vrot.lane.b32.xlu0 %v6632_v6, %s6336_s22  ;;  %v6636_v4 = vpop.f32.mrb[3].mxu0  ;;  %4949 = vmatmul.mubr.msk.f32.vlgmr.msra.gmra.mrb[0].mxu1 %vm384_vm0, %v6632_v6 }
 0x1a9   : > { %695 = vrot.lane.b32.xlu1 %v6636_v4, %s6336_s22  ;;  %5518 = vmatpush3.bf16.msra.mxu1 %v6530_v46 }
 0x1aa   : > { %5520 = vmatprep.subr.bf16.mxu1 %v6535_v48 }
 0x1ab   : > { %v6648_v10 = vpop.f32.mrb[4].mxu0 }
 0x1ac   : > { %862 = vrot.lane.b32.xlu0 %v6620_v0, %s6333_s10  ;;  %v6652_v12 = vpop.f32.mrb[5].mxu0 }
 0x1ad   : > { %6092 = vrot.lane.b32.xlu1 %v6091_v9, %s6334_s11  ;;  %5522 = vmatpush3.bf16.msra.mxu1 %v6535_v48  ;;  %v4544_v9 = vld [vmem:[%s7714_s3 + $0x50] sm:$0xff] }
 0x1ae   : > { %5524 = vmatprep.subr.bf16.mxu1 %v6606_v60 }
 0x1af   : > { %v6665_v19 = vpop.f32.mrb[6].mxu0 }
 0x1b0   : > { %6087 = vrot.lane.b32.xlu0 %v6086_v11, %s6332_s8  ;;  %v514_v21 = vpop.f32.mrb[7].mxu0  ;;  %v4545_v11 = vld [vmem:[%s7714_s3 + $0x58] sm:$0xff] }
 0x1b1   : > { %864 = vrot.lane.b32.xlu1 %v6636_v4, %s6333_s10  ;;  %5526 = vmatpush3.bf16.msra.mxu1 %v6606_v60  ;;  %v6770_v14 = vpack.c.bf16 %v4545_v11, %v4544_v9 }
 0x1b2   : > { %5540 = vmatprep.subr.bf16.mxu1 %v6530_v46 }
 0x1b4   : > { %6097 = vrot.lane.b32.xlu0 %v6096_v20, %s6331_s24 }
 0x1b5   : > { %6102 = vrot.lane.b32.xlu1 %v6101_v22, %s6333_s10 }
 0x1b8   : > { %1061 = vrot.lane.b32.xlu0 %v6648_v10, %s6337_s25 }
 0x1b9   : > { %6107 = vrot.lane.b32.xlu1 %v6106_v29, %s6332_s8 }
 0x1bc   : > { %6112 = vrot.lane.b32.xlu0 %v6111_v30, %s6334_s11 }
 0x1bd   : > { %1063 = vrot.lane.b32.xlu1 %v6665_v19, %s6337_s25 }
 0x1c0   : > { %6117 = vrot.lane.b32.xlu0 %v6116_v37, %s6331_s24 }
 0x1c1   : > { %6122 = vrot.lane.b32.xlu1 %v6121_v38, %s6333_s10 }
 0x1c4   : > { %1235 = vrot.lane.b32.xlu0 %v6652_v12, %s6338_s26 }
 0x1c5   : > { %6132 = vrot.lane.b32.xlu1 %v6131_v45, %s6334_s11 }
 0x1c8   : > { %6127 = vrot.lane.b32.xlu0 %v6126_v16, %s6332_s8 }
 0x1c9   : > { %1237 = vrot.lane.b32.xlu1 %v514_v21, %s6338_s26 }
 0x1cc   : > { %6137 = vrot.lane.b32.xlu0 %v6136_v50, %s6331_s24 }
 0x1cd   : > { %6142 = vrot.lane.b32.xlu1 %v6141_v51, %s6333_s10 }
 0x1d0   : > { %604 = vrot.lane.b32.xlu0 %v6616_v63, %s6337_s25 }
 0x1d1   : > { %606 = vrot.lane.b32.xlu1 %v6632_v6, %s6337_s25  ;;  %v4543_v6 = vld [vmem:[%s7714_s3 + $0x48] sm:$0xff] }
 0x1d2   : > { %v6756_v8 = vpack.c.bf16 %v4543_v6, %v4542_v3 }
 0x1d4   : > { %779 = vrot.lane.b32.xlu0 %v6620_v0, %s6338_s26 }
 0x1d5   : > { %781 = vrot.lane.b32.xlu1 %v6636_v4, %s6338_s26 }
 0x1d8   : > { %1146 = vrot.lane.b32.xlu0 %v6648_v10, %s6336_s22 }
 0x1d9   : > { %1148 = vrot.lane.b32.xlu1 %v6652_v12, %s6336_s22 }
 0x1dc   : > { %1150 = vrot.lane.b32.xlu0 %v6665_v19, %s6336_s22 }
 0x1dd   : > { %1152 = vrot.lane.b32.xlu1 %v514_v21, %s6336_s22 }
 0x1e0   : > { %1318 = vrot.lane.b32.xlu0 %v6652_v12, %s6333_s10 }
 0x1e1   : > { %1320 = vrot.lane.b32.xlu1 %v514_v21, %s6333_s10 }
 0x216   : > { %v690_v52 = vpop.permute.xlu0 %689 }
 0x217   : > { %v692_v53 = vpop.permute.xlu1 %691 }
 0x218   : > { %v698_v54 = vsel %vm697_vm4, %v690_v52, %v692_v53 }
 0x219   : > { %4978 = vmatprep.mubr.msk.f32.mxu0 %vm384_vm0, %v698_v54 }
 0x21a   : > { %v694_v55 = vpop.permute.xlu0 %693 }
 0x21b   : > { %v696_v56 = vpop.permute.xlu1 %695 }
 0x21c   : > { %v699_v31 = vsel %vm697_vm4, %v694_v55, %v696_v56 }
 0x21d   : > { %4979 = vmatmul.mubr.msk.f32.vlgmr.msra.gmra.mrb[8].mxu0 %vm384_vm0, %v699_v31 }
 0x21e   : > { %5554 = vmatpush3.bf16.msra.mxu0 %v6530_v46  ;;  %v863_v58 = vpop.permute.xlu0 %862 }
 0x21f   : > { %5008 = vmatprep.mubr.msk.f32.mxu0 %vm384_vm0, %v863_v58  ;;  %v6093_v59 = vpop.permute.xlu1 %6092  ;;  %5556 = vmatprep.subr.bf16.mxu0 %v6535_v48 }
 0x220   : > { %v6094_v22 = vunpack.i.l.bf16 %v6093_v59  ;;  %v6095_v25 = vunpack.i.h.bf16 %v6093_v59 }
 0x222   : > { %5558 = vmatpush3.bf16.msra.mxu0 %v6535_v48  ;;  %v6743_v63 = vpop.permute.xlu0 %6087 }
 0x223   : > { %v865_v0 = vpop.permute.xlu1 %864  ;;  %5560 = vmatprep.subr.bf16.mxu0 %v6606_v60  ;;  %v6089_v23 = vunpack.i.l.bf16 %v6743_v63  ;;  %v6090_v26 = vunpack.i.h.bf16 %v6743_v63 }
 0x225   : > { %v1555_v34 = vsel %vm398_vm2, %v6089_v23, %v6094_v22  ;;  %v1556_v36 = vsel %vm398_vm2, %v6090_v26, %v6095_v25 }
 0x226   : > { %5562 = vmatpush3.bf16.msra.mxu0 %v6606_v60  ;;  %v6098_v4 = vpop.permute.xlu0 %6097 }
 0x227   : > { %v6103_v7 = vpop.permute.xlu1 %6102  ;;  %5576 = vmatprep.subr.bf16.mxu0 %v6746_v1  ;;  %v6100_v27 = vunpack.i.h.bf16 %v6098_v4  ;;  %v6099_v28 = vunpack.i.l.bf16 %v6098_v4 }
 0x228   : > { %v6105_v30 = vunpack.i.h.bf16 %v6103_v7  ;;  %v6104_v33 = vunpack.i.l.bf16 %v6103_v7 }
 0x229   : > { %5009 = vmatmul.mubr.msk.f32.vlgmr.msra.gmra.mrb[10].mxu0 %vm384_vm0, %v865_v0  ;;  %v1544_v37 = vsel %vm384_vm0, %v6630_v2, %v6100_v27  ;;  %v1543_v38 = vsel %vm384_vm0, %v6627_v5, %v6099_v28 }
 0x22a   : > { %5578 = vmatpush3.bf16.msra.mxu0 %v6746_v1  ;;  %v1062_v12 = vpop.permute.xlu0 %1061  ;;  %v1561_v47 = vsel %vm405_vm3, %v1555_v34, %v6104_v33  ;;  %v1562_v49 = vsel %vm405_vm3, %v1556_v36, %v6105_v30  ;;  %v1549_v53 = vsel %vm391_vm1, %v1543_v38, %v6089_v23  ;;  %v1550_v54 = vsel %vm391_vm1, %v1544_v37, %v6090_v26  ;;  %v6877_v37 = vld [vmem:[%s7713_s2 + $0x38] sm:$0xff] }
 0x22b   : > { %v6766_v13 = vpop.permute.xlu1 %6107  ;;  %5580 = vmatprep.subr.bf16.mxu0 %v6756_v8  ;;  %5038 = vmatprep.mubr.msk.f32.mxu0 %vm384_vm0, %v1062_v12  ;;  %v5623_v58 = vpack.c.bf16 %v1562_v49, %v1561_v47 }
 0x22c   : > { %v6110_v39 = vunpack.i.h.bf16 %v6766_v13  ;;  %v6109_v44 = vunpack.i.l.bf16 %v6766_v13  ;;  %v5625_v13 = vpack.c.bf16 %v1550_v54, %v1549_v53 }
 0x22e   : > { %5582 = vmatpush3.bf16.msra.mxu0 %v6756_v8  ;;  %v6113_v20 = vpop.permute.xlu0 %6112 }
 0x22f   : > { %v1064_v21 = vpop.permute.xlu1 %1063  ;;  %5584 = vmatprep.subr.bf16.mxu0 %v6770_v14  ;;  %v6115_v15 = vunpack.i.h.bf16 %v6113_v20  ;;  %v6114_v45 = vunpack.i.l.bf16 %v6113_v20 }
 0x231   : > { %v1558_v55 = vsel %vm398_vm2, %v6110_v39, %v6115_v15  ;;  %v1557_v56 = vsel %vm398_vm2, %v6109_v44, %v6114_v45 }
 0x232   : > { %5586 = vmatpush3.bf16.msra.mxu0 %v6770_v14  ;;  %v6118_v24 = vpop.permute.xlu0 %6117 }
 0x233   : > { %v6123_v29 = vpop.permute.xlu1 %6122  ;;  %5600 = vmatprep.subr.bf16.mxu0 %v6746_v1  ;;  %v6119_v16 = vunpack.i.l.bf16 %v6118_v24  ;;  %v6120_v2 = vunpack.i.h.bf16 %v6118_v24 }
 0x234   : > { %v6125_v50 = vunpack.i.h.bf16 %v6123_v29  ;;  %v6124_v51 = vunpack.i.l.bf16 %v6123_v29 }
 0x235   : > { %5039 = vmatmul.mubr.msk.f32.vlgmr.msra.gmra.mrb[12].mxu0 %vm384_vm0, %v1064_v21  ;;  %v1545_v31 = vsel %vm384_vm0, %v6659_v17, %v6119_v16  ;;  %v1546_v0 = vsel %vm384_vm0, %v6662_v18, %v6120_v2 }
 0x236   : > { %5602 = vmatpush3.bf16.msra.mxu0 %v6746_v1  ;;  %v1236_v35 = vpop.permute.xlu0 %1235  ;;  %v1563_v6 = vsel %vm405_vm3, %v1557_v56, %v6124_v51  ;;  %v1564_v4 = vsel %vm405_vm3, %v1558_v55, %v6125_v50  ;;  %v1551_v20 = vsel %vm391_vm1, %v1545_v31, %v6109_v44  ;;  %v1552_v23 = vsel %vm391_vm1, %v1546_v0, %v6110_v39 }
 0x237   : > { %5068 = vmatprep.mubr.msk.f32.mxu0 %vm384_vm0, %v1236_v35  ;;  %v6133_v40 = vpop.permute.xlu1 %6132  ;;  %5604 = vmatprep.subr.bf16.mxu0 %v6756_v8  ;;  %v5627_v22 = vpack.c.bf16 %v1564_v4, %v1563_v6  ;;  %v5629_v33 = vpack.c.bf16 %v1552_v23, %v1551_v20 }
 0x238   : > { %v6135_v59 = vunpack.i.h.bf16 %v6133_v40  ;;  %v6134_v61 = vunpack.i.l.bf16 %v6133_v40 }
 0x23a   : > { %5606 = vmatpush3.bf16.msra.mxu0 %v6756_v8  ;;  %v6128_v5 = vpop.permute.xlu0 %6127 }
 0x23b   : > { %v1238_v52 = vpop.permute.xlu1 %1237  ;;  %5608 = vmatprep.subr.bf16.mxu0 %v6770_v14  ;;  %v6130_v62 = vunpack.i.h.bf16 %v6128_v5  ;;  %v6129_v63 = vunpack.i.l.bf16 %v6128_v5 }
 0x23d   : > { %v1559_v21 = vsel %vm398_vm2, %v6129_v63, %v6134_v61  ;;  %v1560_v18 = vsel %vm398_vm2, %v6130_v62, %v6135_v59 }
 0x23e   : > { %5610 = vmatpush3.bf16.msra.mxu0 %v6770_v14  ;;  %v6138_v3 = vpop.permute.xlu0 %6137 }
 0x23f   : > { %v6140_v7 = vunpack.i.h.bf16 %v6138_v3  ;;  %v6139_v9 = vunpack.i.l.bf16 %v6138_v3  ;;  %5624 = vmatprep.subr.bf16.mxu0 %v5623_v58  ;;  %v6143_v11 = vpop.permute.xlu1 %6142 }
 0x240   : > { %v6145_v17 = vunpack.i.h.bf16 %v6143_v11  ;;  %v6144_v12 = vunpack.i.l.bf16 %v6143_v11 }
 0x241   : > { %5069 = vmatmul.mubr.msk.f32.vlgmr.msra.gmra.mrb[14].mxu0 %vm384_vm0, %v1238_v52  ;;  %v1548_v24 = vsel %vm384_vm0, %v6694_v43, %v6140_v7  ;;  %v1547_v25 = vsel %vm384_vm0, %v6691_v42, %v6139_v9 }
 0x242   : > { %5626 = vmatpush1.bf16.msra.mxu0 %v5625_v13  ;;  %v605_v26 = vpop.permute.xlu0 %604  ;;  %v1565_v27 = vsel %vm405_vm3, %v1559_v21, %v6144_v12  ;;  %v1566_v28 = vsel %vm405_vm3, %v1560_v18, %v6145_v17  ;;  %1655 = vmatprep.mubr.f32.mxu0 %v7716_v41  ;;  %v1553_v42 = vsel %vm391_vm1, %v1547_v25, %v6129_v63 }
 0x243   : > { %5628 = vmatprep.subr.bf16.mxu0 %v5627_v22  ;;  %4963 = vmatprep.mubr.msk.f32.mxu1 %vm384_vm0, %v605_v26  ;;  %v607_v29 = vpop.permute.xlu1 %606  ;;  %v5631_v30 = vpack.c.bf16 %v1566_v28, %v1565_v27  ;;  %v1554_v43 = vsel %vm391_vm1, %v1548_v24, %v6130_v62 }
 0x244   : > { %4964 = vmatmul.mubr.msk.f32.vlgmr.msra.gmra.mrb[2].mxu1 %vm384_vm0, %v607_v29  ;;  %v5633_v35 = vpack.c.bf16 %v1554_v43, %v1553_v42  ;;  %v6942_v29 = vld [vmem:[%s6450_s9 + $0x60] sm:$0xff]  ;;  %v6951_v42 = vld [vmem:[%s6464_s7 + $0x68] sm:$0xff] }
 0x245   : > { %5542 = vmatpush3.bf16.msra.mxu1 %v6530_v46 }
 0x246   : > { %5630 = vmatpush1.bf16.msra.mxu0 %v5629_v33  ;;  %v780_v34 = vpop.permute.xlu0 %779  ;;  %5544 = vmatprep.subr.bf16.mxu1 %v6535_v48  ;;  %v6948_v33 = vld [vmem:[%s6464_s7 + $0x60] sm:$0xff] }
 0x247   : > { %5632 = vmatprep.subr.bf16.mxu0 %v5631_v30  ;;  %4993 = vmatprep.mubr.msk.f32.mxu1 %vm384_vm0, %v780_v34  ;;  %v782_v46 = vpop.permute.xlu1 %781  ;;  %v6945_v30 = vld [vmem:[%s6450_s9 + $0x68] sm:$0xff]  ;;  %v3057_v34 = vmul.f32 %v6942_v29, %v6942_v29 }
 0x249   : > { %5546 = vmatpush3.bf16.msra.mxu1 %v6535_v48  ;;  %v1569_v48 = vld [vmem:[%s7713_s2 + $0x20] sm:$0xff] }
 0x24a   : > { %5634 = vmatpush1.bf16.msra.mxu0 %v5633_v35  ;;  %5548 = vmatprep.subr.bf16.mxu1 %v6606_v60 }
 0x24b   : > { %5660 = vmatprep.subr.bf16.mxu0 %v6746_v1 }
 0x24d   : > { %5550 = vmatpush3.bf16.msra.mxu1 %v6606_v60  ;;  %4556 = vmatmul.mubr.msk.f32.vlgmr.msra.gmra.mrb[16].mxu0 %vm384_vm0, %v6587_v32  ;;  %v1570_v32 = vld [vmem:[%s7713_s2 + $0x28] sm:$0xff]  ;;  %v1149_v60 = vpop.permute.xlu1 %1148 }
 0x24e   : > { %5564 = vmatprep.subr.bf16.mxu1 %v6746_v1  ;;  %1661 = vmatprep.mubr.f32.mxu0 %v7716_v41 }
 0x24f   : > { %5662 = vmatpush3.bf16.msra.mxu0 %v6746_v1 }
 0x250   : > { %4994 = vmatmul.mubr.msk.f32.vlgmr.msra.gmra.mrb[4].mxu1 %vm384_vm0, %v782_v46  ;;  %5664 = vmatprep.subr.bf16.mxu0 %v6756_v8  ;;  %v3058_v46 = vmul.f32 %v6945_v30, %v6945_v30 }
 0x251   : > { %5566 = vmatpush3.bf16.msra.mxu1 %v6746_v1  ;;  %5023 = vmatprep.mubr.msk.f32.mxu1 %vm384_vm0, %v6648_v10  ;;  %v6863_v10 = vld [vmem:[%s7713_s2 + $0x30] sm:$0xff] }
 0x252   : > { %4557 = vmatmul.mubr.msk.f32.gmra.mrb[18].mxu0 %vm384_vm0, %v6596_v57  ;;  %5568 = vmatprep.subr.bf16.mxu1 %v6756_v8  ;;  %v1147_v57 = vpop.permute.xlu0 %1146 }
 0x253   : > { %1667 = vmatprep.mubr.f32.mxu0 %v7716_v41  ;;  %5666 = vmatpush3.bf16.msra.mxu0 %v6756_v8  ;;  %v1154_v36 = vsel %vm697_vm4, %v1147_v57, %v1149_v60 }
 0x254   : > { %5668 = vmatprep.subr.bf16.mxu0 %v6770_v14 }
 0x255   : > { %5570 = vmatpush3.bf16.msra.mxu1 %v6756_v8 }
 0x256   : > { %5572 = vmatprep.subr.bf16.mxu1 %v6770_v14  ;;  %4558 = vmatmul.mubr.msk.f32.gmra.mrb[20].mxu0 %vm384_vm0, %v1569_v48  ;;  %v1151_v38 = vpop.permute.xlu0 %1150  ;;  %v3051_v48 = vmul.f32 %v6948_v33, %v6948_v33 }
 0x257   : > { %1673 = vmatprep.mubr.f32.mxu0 %v7716_v41  ;;  %5670 = vmatpush3.bf16.msra.mxu0 %v6770_v14 }
 0x258   : > { %5684 = vmatprep.subr.bf16.mxu0 %v6746_v1 }
 0x259   : > { %5574 = vmatpush3.bf16.msra.mxu1 %v6770_v14 }
 0x25a   : > { %5588 = vmatprep.subr.bf16.mxu1 %v6746_v1  ;;  %4559 = vmatmul.mubr.msk.f32.gmra.mrb[22].mxu0 %vm384_vm0, %v1570_v32  ;;  %v1319_v40 = vpop.permute.xlu0 %1318  ;;  %v3052_v32 = vmul.f32 %v6951_v42, %v6951_v42 }
 0x25b   : > { %1679 = vmatprep.mubr.f32.mxu0 %v7716_v41 }
 0x25c   : > { %5024 = vmatmul.mubr.msk.f32.vlgmr.msra.gmra.mrb[6].mxu1 %vm384_vm0, %v6665_v19  ;;  %v1153_v19 = vpop.permute.xlu1 %1152 }
 0x25d   : > { %5590 = vmatpush3.bf16.msra.mxu1 %v6746_v1  ;;  %5053 = vmatprep.mubr.msk.f32.mxu1 %vm384_vm0, %v1154_v36  ;;  %v1155_v39 = vsel %vm697_vm4, %v1151_v38, %v1153_v19 }
 0x25e   : > { %5592 = vmatprep.subr.bf16.mxu1 %v6756_v8  ;;  %4560 = vmatmul.mubr.msk.f32.gmra.mrb[24].mxu0 %vm384_vm0, %v6863_v10 }
 0x25f   : > { %1685 = vmatprep.mubr.f32.mxu0 %v7716_v41 }
 0x260   : > { %v1321_v44 = vpop.permute.xlu1 %1320 }
 0x261   : > { %5594 = vmatpush3.bf16.msra.mxu1 %v6756_v8 }
 0x262   : > { %5596 = vmatprep.subr.bf16.mxu1 %v6770_v14  ;;  %4561 = vmatmul.mubr.msk.f32.gmra.mrb[26].mxu0 %vm384_vm0, %v6877_v37 }
 0x265   : > { %5598 = vmatpush3.bf16.msra.mxu1 %v6770_v14 }
 0x266   : > { %5612 = vmatprep.subr.bf16.mxu1 %v6746_v1 }
 0x268   : > { %5054 = vmatmul.mubr.msk.f32.vlgmr.msra.gmra.mrb[8].mxu1 %vm384_vm0, %v1155_v39 }
 0x269   : > { %5614 = vmatpush3.bf16.msra.mxu1 %v6746_v1  ;;  %5083 = vmatprep.mubr.msk.f32.mxu1 %vm384_vm0, %v1319_v40 }
 0x26a   : > { %5616 = vmatprep.subr.bf16.mxu1 %v6756_v8 }
 0x26d   : > { %5618 = vmatpush3.bf16.msra.mxu1 %v6756_v8 }
 0x26e   : > { %5620 = vmatprep.subr.bf16.mxu1 %v6770_v14 }
 0x271   : > { %5622 = vmatpush3.bf16.msra.mxu1 %v6770_v14 }
 0x272   : > { %5636 = vmatprep.subr.bf16.mxu1 %v6746_v1 }
 0x274   : > { %5084 = vmatmul.mubr.msk.f32.vlgmr.msra.gmra.mrb[10].mxu1 %vm384_vm0, %v1321_v44  ;;  %v6151_v44 = vpack.i.bf16 %v3058_v46, %v3057_v34 }
 0x275   : > { %5638 = vmatpush3.bf16.msra.mxu1 %v6746_v1 }
 0x276   : > { %5640 = vmatprep.subr.bf16.mxu1 %v6756_v8 }
 0x279   : > { %5642 = vmatpush3.bf16.msra.mxu1 %v6756_v8 }
 0x27a   : > { %5644 = vmatprep.subr.bf16.mxu1 %v6770_v14 }
 0x27b   : > { %v4950_v15 = vpop.f32.mrb[0].mxu1 }
 0x27c   : > { %v595_v45 = vpop.f32.mrb[1].mxu1  ;;  %v946_v16 = vmul.f32 %v4950_v15, %v4950_v15 }
 0x27d   : > { %5646 = vmatpush3.bf16.msra.mxu1 %v6770_v14  ;;  %v945_v47 = vmul.f32 %v595_v45, %v595_v45 }
 0x27e   : > { %5648 = vmatprep.subr.bf16.mxu1 %v6746_v1 }
 0x2f0   : > { %v4980_v49 = vpop.f32.mrb[8].mxu0 }
 0x2f1   : > { %v952_v2 = vsub.f32 %v4980_v49, %v946_v16  ;;  %v770_v50 = vpop.f32.mrb[9].mxu0 }
 0x2f2   : > { %v951_v51 = vsub.f32 %v770_v50, %v945_v47 }
 0x2fc   : > { %v5010_v5 = vpop.f32.mrb[10].mxu0 }
 0x2fd   : > { %v936_v52 = vpop.f32.mrb[11].mxu0 }
 0x308   : > { %v5040_v53 = vpop.f32.mrb[12].mxu0 }
 0x309   : > { %v1135_v54 = vpop.f32.mrb[13].mxu0  ;;  %v6901_v55 = vmul.f32 %v5040_v53, %v5040_v53 }
 0x30a   : > { %v6903_v56 = vmul.f32 %v1135_v54, %v1135_v54 }
 0x314   : > { %v6905_v31 = vpop.f32.mrb[14].mxu0 }
 0x315   : > { %v1410_v58 = vsub.f32 %v6905_v31, %v6901_v55  ;;  %v6909_v59 = vpop.f32.mrb[15].mxu0 }
 0x316   : > { %v1409_v61 = vsub.f32 %v6909_v59, %v6903_v56  ;;  %v7045_v56 = vld [vmem:[%s6450_s9 + $0x88] sm:$0xff]  ;;  %v7048_v59 = vld [vmem:[%s6464_s7 + $0x80] sm:$0xff] }
 0x317   : > { %v4965_v62 = vpop.f32.mrb[2].mxu1 }
 0x318   : > { %v950_v63 = vmul.f32 %v4965_v62, %v4950_v15  ;;  %v678_v0 = vpop.f32.mrb[3].mxu1  ;;  %v948_v11 = vmul.f32 %v4965_v62, %v4965_v62  ;;  %v6146_v15 = vpack.i.bf16 %v3052_v32, %v3051_v48  ;;  %v7000_v62 = vld [vmem:[%s6464_s7 + $0x70] sm:$0xff] }
 0x319   : > { %v949_v3 = vmul.f32 %v678_v0, %v595_v45  ;;  %v947_v17 = vmul.f32 %v678_v0, %v678_v0 }
 0x31a   : > { %v956_v6 = vsub.f32 %v5010_v5, %v950_v63  ;;  %v3064_v5 = vmul.f32 %v6945_v30, %v6951_v42  ;;  %v7003_v63 = vld [vmem:[%s6464_s7 + $0x78] sm:$0xff] }
 0x31b   : > { %v955_v4 = vsub.f32 %v936_v52, %v949_v3  ;;  %v7008_v3 = vld [vmem:[%s6450_s9 + $0x70] sm:$0xff] }
 0x31c   : > { %v958_v57 = vmul.f32 2.0, %v956_v6  ;;  %v7011_v6 = vld [vmem:[%s6450_s9 + $0x78] sm:$0xff]  ;;  %v3065_v31 = vmul.f32 %v7008_v3, %v7000_v62 }
 0x31d   : > { %v957_v36 = vmul.f32 2.0, %v955_v4  ;;  %v6176_v55 = vpack.i.bf16 %v7011_v6, %v7008_v3 }
 0x31e   : > { %v960_v16 = vadd.f32 0.0009, %v958_v57 }
 0x31f   : > { %v959_v49 = vadd.f32 0.0009, %v957_v36  ;;  %v7042_v36 = vld [vmem:[%s6450_s9 + $0x80] sm:$0xff] }
 0x320   : > { %v6913_v7 = vpop.f32.mrb[16].mxu0 }
 0x321   : > { %1773 = vrot.lane.b32.xlu0 %v6913_v7, %s6337_s25  ;;  %v6917_v9 = vpop.f32.mrb[17].mxu0  ;;  %5098 = vmatprep.mubr.msk.f32.mxu1 %vm384_vm0, %v6913_v7 }
 0x323   : > { %v4995_v12 = vpop.f32.mrb[4].mxu1 }
 0x324   : > { %v954_v13 = vsub.f32 %v4995_v12, %v948_v11  ;;  %v853_v20 = vpop.f32.mrb[5].mxu1  ;;  %v3053_v11 = vmul.f32 %v7000_v62, %v7000_v62 }
 0x325   : > { %v953_v21 = vsub.f32 %v853_v20, %v947_v17  ;;  %v6921_v18 = vpop.f32.mrb[18].mxu0  ;;  %1947 = vrot.lane.b32.xlu0 %v6917_v9, %s6338_s26  ;;  %v3054_v17 = vmul.f32 %v7003_v63, %v7003_v63  ;;  %v3060_v20 = vmul.f32 %v7011_v6, %v7011_v6 }
 0x326   : > { %v962_v22 = vadd.f32 %v954_v13, %v952_v2  ;;  %1775 = vrot.lane.b32.xlu1 %v6921_v18, %s6337_s25  ;;  %v6927_v23 = vpop.f32.mrb[19].mxu0  ;;  %5099 = vmatmul.mubr.msk.f32.vlgmr.msra.gmra.mrb[12].mxu1 %vm384_vm0, %v6921_v18  ;;  %v3059_v13 = vmul.f32 %v7008_v3, %v7008_v3 }
 0x327   : > { %v961_v24 = vadd.f32 %v953_v21, %v951_v51  ;;  %5650 = vmatpush3.bf16.msra.mxu1 %v6746_v1  ;;  %v3063_v51 = vmul.f32 %v6942_v29, %v6948_v33  ;;  %v6166_v46 = vpack.i.bf16 %v3054_v17, %v3053_v11 }
 0x328   : > { %v964_v25 = vadd.f32 0.0009, %v962_v22  ;;  %5652 = vmatprep.subr.bf16.mxu1 %v6756_v8  ;;  %v6171_v48 = vpack.i.bf16 %v3060_v20, %v3059_v13 }
 0x329   : > { %v963_v26 = vadd.f32 0.0009, %v961_v24  ;;  %v6933_v27 = vpop.f32.mrb[20].mxu0  ;;  %v6161_v4 = vpack.i.bf16 %v3064_v5, %v3063_v51 }
 0x32a   : > { %6206 = vrcp.f32 %v964_v25  ;;  %1949 = vrot.lane.b32.xlu1 %v6927_v23, %s6338_s26  ;;  %v6937_v28 = vpop.f32.mrb[21].mxu0  ;;  %2312 = vrot.lane.b32.xlu0 %v6933_v27, %s6336_s22 }
 0x32b   : > { %6208 = vrcp.f32 %v963_v26  ;;  %5654 = vmatpush3.bf16.msra.mxu1 %v6756_v8 }
 0x32c   : > { %5656 = vmatprep.subr.bf16.mxu1 %v6770_v14 }
 0x32d   : > { %v6955_v43 = vpop.f32.mrb[22].mxu0 }
 0x32e   : > { %2314 = vrot.lane.b32.xlu1 %v6937_v28, %s6336_s22  ;;  %v6961_v35 = vpop.f32.mrb[23].mxu0  ;;  %2316 = vrot.lane.b32.xlu0 %v6955_v43, %s6336_s22 }
 0x32f   : > { %v5025_v60 = vpop.f32.mrb[6].mxu1  ;;  %5658 = vmatpush3.bf16.msra.mxu1 %v6770_v14 }
 0x330   : > { %v6972_v38 = vmul.f32 %v5040_v53, %v5025_v60  ;;  %v1052_v19 = vpop.f32.mrb[7].mxu1  ;;  %5672 = vmatprep.subr.bf16.mxu1 %v6746_v1  ;;  %v1402_v12 = vmul.f32 %v5025_v60, %v5025_v60 }
 0x331   : > { %v6975_v39 = vmul.f32 %v1135_v54, %v1052_v19  ;;  %v6977_v40 = vpop.f32.mrb[24].mxu0  ;;  %v6156_v54 = vpack.i.bf16 %v6945_v30, %v6942_v29  ;;  %v1401_v21 = vmul.f32 %v1052_v19, %v1052_v19  ;;  %v3061_v19 = vmul.f32 %v7042_v36, %v7042_v36 }
 0x332   : > { %2318 = vrot.lane.b32.xlu1 %v6961_v35, %s6336_s22  ;;  %2484 = vrot.lane.b32.xlu0 %v6937_v28, %s6333_s10  ;;  %v6983_v45 = vpop.f32.mrb[25].mxu0 }
 0x334   : > { %v6207_v47 = vpop.eup %6206 }
 0x335   : > { %v6209_v2 = vpop.eup %6208  ;;  %v6985_v50 = vmul.f32 %v6207_v47, %v960_v16  ;;  %v6991_v52 = vpop.f32.mrb[26].mxu0  ;;  %v3055_v16 = vmul.f32 %v7048_v59, %v7048_v59 }
 0x336   : > { %6152 = vrot.lane.b32.xlu1 %v6151_v44, %s6334_s11  ;;  %6147 = vrot.lane.b32.xlu0 %v6146_v15, %s6332_s8  ;;  %v6995_v53 = vmul.f32 %v6209_v2, %v959_v49  ;;  %v7005_v0 = vpop.f32.mrb[27].mxu0  ;;  %v3062_v44 = vmul.f32 %v7045_v56, %v7045_v56 }
 0x337   : > { %v970_v13 = vmul.f32 %v6985_v50, %v6985_v50 }
 0x33a   : > { %2486 = vrot.lane.b32.xlu1 %v6961_v35, %s6333_s10  ;;  %6157 = vrot.lane.b32.xlu0 %v6156_v54, %s6331_s24 }
 0x33b   : > { %v5055_v22 = vpop.f32.mrb[8].mxu1 }
 0x33c   : > { %v1408_v24 = vsub.f32 %v5055_v22, %v1402_v12  ;;  %v1226_v25 = vpop.f32.mrb[9].mxu1 }
 0x33d   : > { %v1407_v26 = vsub.f32 %v1226_v25, %v1401_v21 }
 0x33e   : > { %v1418_v34 = vadd.f32 %v1410_v58, %v1408_v24  ;;  %6162 = vrot.lane.b32.xlu1 %v6161_v4, %s6333_s10  ;;  %2685 = vrot.lane.b32.xlu0 %v6977_v40, %s6337_s25  ;;  %v3066_v58 = vmul.f32 %v7011_v6, %v7003_v63  ;;  %v6191_v4 = vpack.i.bf16 %v3062_v44, %v3061_v19  ;;  %v4573_v44 = vld [vmem:[%s7714_s3 + $0x68] sm:$0xff] }
 0x33f   : > { %v1417_v32 = vadd.f32 %v1409_v61, %v1407_v26  ;;  %v7051_v61 = vld [vmem:[%s6464_s7 + $0x88] sm:$0xff]  ;;  %v6196_v26 = vpack.i.bf16 %v7045_v56, %v7042_v36 }
 0x340   : > { %v1420_v57 = vadd.f32 0.0009, %v1418_v34  ;;  %v6181_v15 = vpack.i.bf16 %v3066_v58, %v3065_v31  ;;  %v3056_v47 = vmul.f32 %v7051_v61, %v7051_v61  ;;  %v3068_v25 = vmul.f32 %v7045_v56, %v7051_v61 }
 0x341   : > { %v1419_v60 = vadd.f32 0.0009, %v1417_v32 }
 0x342   : > { %6210 = vrcp.f32 %v1420_v57  ;;  %6167 = vrot.lane.b32.xlu1 %v6166_v46, %s6332_s8  ;;  %6172 = vrot.lane.b32.xlu0 %v6171_v48, %s6334_s11  ;;  %v6186_v11 = vpack.i.bf16 %v3056_v47, %v3055_v16  ;;  %v972_v46 = vmul.f32 %v970_v13, %v6985_v50  ;;  %v4574_v47 = vld [vmem:[%s7714_s3 + $0x70] sm:$0xff] }
 0x343   : > { %6212 = vrcp.f32 %v1419_v60 }
 0x346   : > { %2687 = vrot.lane.b32.xlu1 %v6991_v52, %s6337_s25  ;;  %6177 = vrot.lane.b32.xlu0 %v6176_v55, %s6331_s24 }
 0x347   : > { %v5085_v49 = vpop.f32.mrb[10].mxu1 }
 0x348   : > { %v1412_v2 = vsub.f32 %v5085_v49, %v6972_v38  ;;  %v1392_v51 = vpop.f32.mrb[11].mxu1  ;;  %v969_v38 = vmul.f32 %v6995_v53, %v6995_v53  ;;  %v4575_v49 = vld [vmem:[%s7714_s3 + $0x78] sm:$0xff] }
 0x349   : > { %v1411_v5 = vsub.f32 %v1392_v51, %v6975_v39  ;;  %v3067_v39 = vmul.f32 %v7042_v36, %v7048_v59 }
 0x34a   : > { %v1414_v54 = vmul.f32 2.0, %v1412_v2  ;;  %6182 = vrot.lane.b32.xlu1 %v6181_v15, %s6333_s10  ;;  %2859 = vrot.lane.b32.xlu0 %v6983_v45, %s6338_s26  ;;  %v971_v32 = vmul.f32 %v969_v38, %v6995_v53  ;;  %v4572_v53 = vld [vmem:[%s7714_s3 + $0x60] sm:$0xff] }
 0x34b   : > { %v1413_v17 = vmul.f32 2.0, %v1411_v5  ;;  %v6201_v55 = vpack.i.bf16 %v3068_v25, %v3067_v39  ;;  %v7104_v16 = vpack.c.bf16 %v4573_v44, %v4572_v53  ;;  %v7114_v5 = vpack.c.bf16 %v4575_v49, %v4574_v47  ;;  %v4592_v53 = vld [vmem:[%s7714_s3 + $0xb0] sm:$0xff]  ;;  %v4593_v44 = vld [vmem:[%s7714_s3 + $0xb8] sm:$0xff] }
 0x34c   : > { %v6211_v12 = vpop.eup %6210  ;;  %v1416_v20 = vadd.f32 0.0009, %v1414_v54  ;;  %v4576_v54 = vld [vmem:[%s7714_s3 + $0x80] sm:$0xff]  ;;  %v7184_v49 = vpack.c.bf16 %v4593_v44, %v4592_v53 }
 0x34d   : > { %v6213_v21 = vpop.eup %6212  ;;  %v1415_v22 = vadd.f32 0.0009, %v1413_v17  ;;  %7736 = vst [vmem:[#allocation7_spill] sm:$0xff] %v7114_v5 }
 0x34e   : > { %v1424_v24 = vmul.f32 %v6211_v12, %v1416_v20  ;;  %6192 = vrot.lane.b32.xlu1 %v6191_v4, %s6334_s11  ;;  %6187 = vrot.lane.b32.xlu0 %v6186_v11, %s6332_s8  ;;  %v4577_v4 = vld [vmem:[%s7714_s3 + $0x88] sm:$0xff] }
 0x34f   : > { %v1422_v34 = vmul.f32 %v6213_v21, %v1415_v22  ;;  %v7127_v17 = vpack.c.bf16 %v4577_v4, %v4576_v54 }
 0x350   : > { %v1426_v48 = vmul.f32 %v1424_v24, %v1424_v24 }
 0x351   : > { %v1425_v57 = vmul.f32 %v1422_v34, %v1422_v34  ;;  %7737 = vst [vmem:[#allocation8_spill] sm:$0xff] %v7127_v17 }
 0x352   : > { %v7083_v60 = vmul.f32 %v1426_v48, %v972_v46  ;;  %2861 = vrot.lane.b32.xlu1 %v7005_v0, %s6338_s26  ;;  %6197 = vrot.lane.b32.xlu0 %v6196_v26, %s6331_s24  ;;  %v4588_v46 = vld [vmem:[%s7714_s3 + $0x90] sm:$0xff]  ;;  %v4589_v48 = vld [vmem:[%s7714_s3 + $0x98] sm:$0xff] }
 0x353   : > { %v7088_v31 = vmul.f32 %v1425_v57, %v971_v32  ;;  %v7162_v32 = vpack.c.bf16 %v4589_v48, %v4588_v46 }
 0x354   : > { %7734 = vst [vmem:[#allocation5_spill] sm:$0xff] %v7083_v60 }
 0x355   : > { %7735 = vst [vmem:[#allocation6_spill] sm:$0xff] %v7088_v31 }
 0x356   : > { %6202 = vrot.lane.b32.xlu1 %v6201_v55, %s6333_s10  ;;  %v4590_v55 = vld [vmem:[%s7714_s3 + $0xa0] sm:$0xff] }
 0x393   : > { %v1774_v58 = vpop.permute.xlu0 %1773 }
 0x394   : > { %5113 = vmatprep.mubr.msk.f32.mxu1 %vm384_vm0, %v1774_v58  ;;  %v4591_v58 = vld [vmem:[%s7714_s3 + $0xa8] sm:$0xff] }
 0x397   : > { %v1948_v50 = vpop.permute.xlu0 %1947 }
 0x398   : > { %v1776_v19 = vpop.permute.xlu1 %1775 }
 0x399   : > { %5114 = vmatmul.mubr.msk.f32.vlgmr.msra.gmra.mrb[14].mxu1 %vm384_vm0, %v1776_v19  ;;  %v7172_v19 = vpack.c.bf16 %v4591_v58, %v4590_v55 }
 0x39a   : > { %5674 = vmatpush3.bf16.msra.mxu1 %v6746_v1  ;;  %5143 = vmatprep.mubr.msk.f32.mxu1 %vm384_vm0, %v1948_v50 }
 0x39b   : > { %5676 = vmatprep.subr.bf16.mxu1 %v6756_v8 }
 0x39c   : > { %v1950_v15 = vpop.permute.xlu1 %1949  ;;  %v2313_v2 = vpop.permute.xlu0 %2312 }
 0x39e   : > { %5678 = vmatpush3.bf16.msra.mxu1 %v6756_v8 }
 0x39f   : > { %5680 = vmatprep.subr.bf16.mxu1 %v6770_v14 }
 0x3a0   : > { %v2315_v51 = vpop.permute.xlu1 %2314  ;;  %v2317_v11 = vpop.permute.xlu0 %2316 }
 0x3a1   : > { %v2320_v21 = vsel %vm697_vm4, %v2313_v2, %v2315_v51 }
 0x3a2   : > { %5682 = vmatpush3.bf16.msra.mxu1 %v6770_v14 }
 0x3a3   : > { %5696 = vmatprep.subr.bf16.mxu1 %v7104_v16 }
 0x3a4   : > { %v2319_v12 = vpop.permute.xlu1 %2318  ;;  %v2485_v13 = vpop.permute.xlu0 %2484 }
 0x3a5   : > { %5144 = vmatmul.mubr.msk.f32.vlgmr.msra.gmra.mrb[16].mxu1 %vm384_vm0, %v1950_v15  ;;  %v2321_v25 = vsel %vm697_vm4, %v2317_v11, %v2319_v12 }
 0x3a6   : > { %5698 = vmatpush3.bf16.msra.mxu1 %v7104_v16  ;;  %5173 = vmatprep.mubr.msk.f32.mxu1 %vm384_vm0, %v6933_v27 }
 0x3a7   : > { %5700 = vmatprep.subr.bf16.mxu1 %v7114_v5 }
 0x3a8   : > { %v6153_v20 = vpop.permute.xlu1 %6152  ;;  %v7138_v38 = vpop.permute.xlu0 %6147 }
 0x3a9   : > { %v6155_v51 = vunpack.i.h.bf16 %v6153_v20  ;;  %v6154_v54 = vunpack.i.l.bf16 %v6153_v20  ;;  %v6150_v4 = vunpack.i.h.bf16 %v7138_v38  ;;  %v6149_v11 = vunpack.i.l.bf16 %v7138_v38 }
 0x3aa   : > { %5702 = vmatpush3.bf16.msra.mxu1 %v7114_v5 }
 0x3ab   : > { %5704 = vmatprep.subr.bf16.mxu1 %v7127_v17  ;;  %v3178_v46 = vsel %vm398_vm2, %v6150_v4, %v6155_v51 }
 0x3ac   : > { %v2487_v22 = vpop.permute.xlu1 %2486  ;;  %v6158_v39 = vpop.permute.xlu0 %6157 }
 0x3ae   : > { %5706 = vmatpush3.bf16.msra.mxu1 %v7127_v17 }
 0x3af   : > { %5720 = vmatprep.subr.bf16.mxu1 %v7104_v16 }
 0x3b0   : > { %v7143_v24 = vpop.permute.xlu1 %6162  ;;  %v2686_v26 = vpop.permute.xlu0 %2685 }
 0x3b1   : > { %5174 = vmatmul.mubr.msk.f32.vlgmr.msra.gmra.mrb[18].mxu1 %vm384_vm0, %v6955_v43  ;;  %v6165_v20 = vunpack.i.h.bf16 %v7143_v24 }
 0x3b2   : > { %5722 = vmatpush3.bf16.msra.mxu1 %v7104_v16  ;;  %5203 = vmatprep.mubr.msk.f32.mxu1 %vm384_vm0, %v2320_v21  ;;  %v6159_v21 = vunpack.i.l.bf16 %v6158_v39 }
 0x3b3   : > { %5724 = vmatprep.subr.bf16.mxu1 %v7114_v5 }
 0x3b4   : > { %v7152_v34 = vpop.permute.xlu1 %6167  ;;  %v6173_v57 = vpop.permute.xlu0 %6172 }
 0x3b5   : > { %v6170_v38 = vunpack.i.h.bf16 %v7152_v34  ;;  %v6169_v48 = vunpack.i.l.bf16 %v7152_v34  ;;  %v6175_v55 = vunpack.i.h.bf16 %v6173_v57  ;;  %v6174_v58 = vunpack.i.l.bf16 %v6173_v57 }
 0x3b6   : > { %5726 = vmatpush3.bf16.msra.mxu1 %v7114_v5  ;;  %v3184_v57 = vsel %vm405_vm3, %v3178_v46, %v6165_v20 }
 0x3b7   : > { %5728 = vmatprep.subr.bf16.mxu1 %v7127_v17 }
 0x3b8   : > { %v2688_v50 = vpop.permute.xlu1 %2687  ;;  %v6178_v15 = vpop.permute.xlu0 %6177 }
 0x3b9   : > { %v6180_v44 = vunpack.i.h.bf16 %v6178_v15  ;;  %v6179_v51 = vunpack.i.l.bf16 %v6178_v15 }
 0x3ba   : > { %5730 = vmatpush3.bf16.msra.mxu1 %v7127_v17 }
 0x3bb   : > { %5744 = vmatprep.subr.bf16.mxu1 %v7104_v16  ;;  %v3167_v20 = vsel %vm384_vm0, %v7000_v62, %v6179_v51 }
 0x3bc   : > { %v6183_v47 = vpop.permute.xlu1 %6182  ;;  %v2860_v2 = vpop.permute.xlu0 %2859  ;;  %v3173_v51 = vsel %vm391_vm1, %v3167_v20, %v6169_v48  ;;  %v6240_v20 = vld [vmem:[%s6450_s9 + $0x8] sm:$0xff] }
 0x3bd   : > { %5204 = vmatmul.mubr.msk.f32.vlgmr.msra.gmra.mrb[20].mxu1 %vm384_vm0, %v2321_v25  ;;  %v6184_v34 = vunpack.i.l.bf16 %v6183_v47  ;;  %v6185_v41 = vunpack.i.h.bf16 %v6183_v47  ;;  %v3168_v47 = vsel %vm384_vm0, %v7003_v63, %v6180_v44 }
 0x3be   : > { %5746 = vmatpush3.bf16.msra.mxu1 %v7104_v16  ;;  %5233 = vmatprep.mubr.msk.f32.mxu1 %vm384_vm0, %v2485_v13  ;;  %v6160_v13 = vunpack.i.h.bf16 %v6158_v39 }
 0x3bf   : > { %5748 = vmatprep.subr.bf16.mxu1 %v7114_v5 }
 0x3c0   : > { %v6193_v12 = vpop.permute.xlu1 %6192  ;;  %v7193_v25 = vpop.permute.xlu0 %6187  ;;  %v3166_v53 = vsel %vm384_vm0, %v6951_v42, %v6160_v13 }
 0x3c1   : > { %v6195_v60 = vunpack.i.h.bf16 %v6193_v12  ;;  %v6194_v13 = vunpack.i.l.bf16 %v6193_v12  ;;  %v3172_v46 = vsel %vm391_vm1, %v3166_v53, %v6150_v4 }
 0x3c2   : > { %5750 = vmatpush3.bf16.msra.mxu1 %v7114_v5 }
 0x3c3   : > { %5752 = vmatprep.subr.bf16.mxu1 %v7127_v17 }
 0x3c4   : > { %v2862_v39 = vpop.permute.xlu1 %2861  ;;  %v6198_v31 = vpop.permute.xlu0 %6197 }
 0x3c6   : > { %5754 = vmatpush3.bf16.msra.mxu1 %v7127_v17  ;;  %v6190_v17 = vunpack.i.h.bf16 %v7193_v25 }
 0x3c7   : > { %5768 = vmatprep.subr.bf16.mxu1 %v7162_v32 }
 0x3c8   : > { %v3182_v4 = vsel %vm398_vm2, %v6190_v17, %v6195_v60 }
 0x3c9   : > { %5234 = vmatmul.mubr.msk.f32.vlgmr.msra.gmra.mrb[22].mxu1 %vm384_vm0, %v2487_v22  ;;  %v6164_v22 = vunpack.i.l.bf16 %v7143_v24  ;;  %v3165_v24 = vsel %vm384_vm0, %v6948_v33, %v6159_v21  ;;  %v6189_v21 = vunpack.i.l.bf16 %v7193_v25  ;;  %v6199_v25 = vunpack.i.l.bf16 %v6198_v31 }
 0x3ca   : > { %5770 = vmatpush3.bf16.msra.mxu1 %v7162_v32  ;;  %5263 = vmatprep.mubr.msk.f32.mxu1 %vm384_vm0, %v2686_v26  ;;  %v3177_v26 = vsel %vm398_vm2, %v6149_v11, %v6154_v54  ;;  %v3180_v54 = vsel %vm398_vm2, %v6170_v38, %v6175_v55  ;;  %v6200_v55 = vunpack.i.h.bf16 %v6198_v31  ;;  %v3174_v31 = vsel %vm391_vm1, %v3168_v47, %v6170_v38 }
 0x3cb   : > { %5772 = vmatprep.subr.bf16.mxu1 %v7172_v19 }
 0x3ce   : > { %5774 = vmatpush3.bf16.msra.mxu1 %v7172_v19 }
 0x3cf   : > { %5776 = vmatprep.subr.bf16.mxu1 %v7184_v49 }
 0x3d2   : > { %5778 = vmatpush3.bf16.msra.mxu1 %v7184_v49 }
 0x3d3   : > { %5792 = vmatprep.subr.bf16.mxu1 %v7162_v32 }
 0x3d5   : > { %5264 = vmatmul.mubr.msk.f32.vlgmr.msra.gmra.mrb[24].mxu1 %vm384_vm0, %v2688_v50  ;;  %v3183_v50 = vsel %vm405_vm3, %v3177_v26, %v6164_v22  ;;  %v6203_v22 = vpop.permute.xlu1 %6202  ;;  %v3171_v26 = vsel %vm391_vm1, %v3165_v24, %v6149_v11  ;;  %v3181_v11 = vsel %vm398_vm2, %v6189_v21, %v6194_v13  ;;  %v3170_v24 = vsel %vm384_vm0, %v7051_v61, %v6200_v55 }
 0x3d6   : > { %5794 = vmatpush3.bf16.msra.mxu1 %v7162_v32  ;;  %5293 = vmatprep.mubr.msk.f32.mxu1 %vm384_vm0, %v2860_v2  ;;  %v3179_v2 = vsel %vm398_vm2, %v6169_v48, %v6174_v58  ;;  %v5815_v15 = vpack.c.bf16 %v3184_v57, %v3183_v50  ;;  %v6205_v58 = vunpack.i.h.bf16 %v6203_v22  ;;  %v6204_v5 = vunpack.i.l.bf16 %v6203_v22 }
 0x3d7   : > { %5796 = vmatprep.subr.bf16.mxu1 %v7172_v19  ;;  %v3185_v12 = vsel %vm405_vm3, %v3179_v2, %v6184_v34  ;;  %v3186_v50 = vsel %vm405_vm3, %v3180_v54, %v6185_v41  ;;  %v5817_v53 = vpack.c.bf16 %v3172_v46, %v3171_v26  ;;  %v3169_v34 = vsel %vm384_vm0, %v7048_v59, %v6199_v25 }
 0x3d8   : > { %v5819_v44 = vpack.c.bf16 %v3186_v50, %v3185_v12  ;;  %v3187_v41 = vsel %vm405_vm3, %v3181_v11, %v6204_v5  ;;  %v3188_v60 = vsel %vm405_vm3, %v3182_v4, %v6205_v58  ;;  %v7738_v57 = vmov 0.0   ;;  %v7251_v5 = vld [vmem:[%s7713_s2 + $0x40] sm:$0xff] }
 0x3d9   : > { %v5821_v54 = vpack.c.bf16 %v3174_v31, %v3173_v51  ;;  %v5823_v2 = vpack.c.bf16 %v3188_v60, %v3187_v41  ;;  %v3176_v13 = vsel %vm391_vm1, %v3170_v24, %v6190_v17 }
 0x3da   : > { %5798 = vmatpush3.bf16.msra.mxu1 %v7172_v19 }
 0x3db   : > { %5800 = vmatprep.subr.bf16.mxu1 %v7184_v49 }
 0x3de   : > { %5802 = vmatpush3.bf16.msra.mxu1 %v7184_v49 }
 0x3df   : > { %5816 = vmatprep.subr.bf16.mxu1 %v5815_v15 }
 0x3e1   : > { %5294 = vmatmul.mubr.msk.f32.vlgmr.msra.gmra.mrb[26].mxu1 %vm384_vm0, %v2862_v39  ;;  %v3175_v39 = vsel %vm391_vm1, %v3169_v34, %v6189_v21 }
 0x3e2   : > { %5818 = vmatpush1.bf16.msra.mxu1 %v5817_v53  ;;  %3269 = vmatprep.mubr.f32.mxu1 %v7738_v57  ;;  %v5825_v38 = vpack.c.bf16 %v3176_v13, %v3175_v39 }
 0x3e3   : > { %5820 = vmatprep.subr.bf16.mxu1 %v5819_v44 }
 0x3e6   : > { %5822 = vmatpush1.bf16.msra.mxu1 %v5821_v54 }
 0x3e7   : > { %5824 = vmatprep.subr.bf16.mxu1 %v5823_v2 }
 0x3ea   : > { %5826 = vmatpush1.bf16.msra.mxu1 %v5825_v38 }
 0x3eb   : > { %5852 = vmatprep.subr.bf16.mxu1 %v7162_v32 }
 0x3ed   : > { %4604 = vmatmul.mubr.msk.f32.vlgmr.msra.gmra.mrb[28].mxu1 %vm384_vm0, %v6863_v10  ;;  %v7261_v10 = vld [vmem:[%s7713_s2 + $0x48] sm:$0xff] }
 0x3ee   : > { %3275 = vmatprep.mubr.f32.mxu1 %v7738_v57  ;;  %5854 = vmatpush3.bf16.msra.mxu1 %v7162_v32 }
 0x3ef   : > { %5856 = vmatprep.subr.bf16.mxu1 %v7172_v19 }
 0x3f1   : > { %4605 = vmatmul.mubr.msk.f32.gmra.mrb[30].mxu1 %vm384_vm0, %v6877_v37 }
 0x3f2   : > { %3281 = vmatprep.mubr.f32.mxu1 %v7738_v57  ;;  %5858 = vmatpush3.bf16.msra.mxu1 %v7172_v19 }
 0x3f3   : > { %5860 = vmatprep.subr.bf16.mxu1 %v7184_v49 }
 0x3f5   : > { %4606 = vmatmul.mubr.msk.f32.gmra.mrb[32].mxu1 %vm384_vm0, %v7251_v5 }
 0x3f6   : > { %3287 = vmatprep.mubr.f32.mxu1 %v7738_v57  ;;  %5862 = vmatpush3.bf16.msra.mxu1 %v7184_v49 }
 0x3f7   : > { %5876 = vmatprep.subr.bf16.mxu1 %v7162_v32 }
 0x3f9   : > { %v7265_v37 = vpop.f32.mrb[12].mxu1  ;;  %4607 = vmatmul.mubr.msk.f32.gmra.mrb[34].mxu1 %vm384_vm0, %v7261_v10 }
 0x3fa   : > { %v7269_v17 = vpop.f32.mrb[13].mxu1 }
 0x46c   : > { %v5115_v48 = vpop.f32.mrb[14].mxu1 }
 0x46d   : > { %v7272_v21 = vmul.f32 %v5115_v48, %v7265_v37  ;;  %v1847_v22 = vpop.f32.mrb[15].mxu1  ;;  %v7277_v26 = vmul.f32 %v5115_v48, %v5115_v48 }
 0x46e   : > { %v7275_v15 = vmul.f32 %v1847_v22, %v7269_v17  ;;  %v7279_v46 = vmul.f32 %v1847_v22, %v1847_v22 }
 0x478   : > { %v7281_v47 = vpop.f32.mrb[16].mxu1 }
 0x479   : > { %v7285_v55 = vpop.f32.mrb[17].mxu1 }
 0x484   : > { %v7289_v58 = vpop.f32.mrb[18].mxu1 }
 0x485   : > { %v7291_v25 = vpop.f32.mrb[19].mxu1  ;;  %v7295_v50 = vmul.f32 %v7289_v58, %v7289_v58 }
 0x486   : > { %v7299_v11 = vmul.f32 %v7291_v25, %v7291_v25 }
 0x487   : > { %7739 = vst [vmem:[#allocation9_spill] sm:$0xff] %v7295_v50 }
 0x488   : > { %7740 = vst [vmem:[#allocation10_spill] sm:$0xff] %v7299_v11 }
 0x490   : > { %v7301_v4 = vpop.f32.mrb[20].mxu1 }
 0x491   : > { %v7305_v24 = vpop.f32.mrb[21].mxu1 }
 0x492   : > { %7741 = vst [vmem:[#allocation11_spill] sm:$0xff] %v7305_v24 }
 0x49c   : > { %v7309_v51 = vpop.f32.mrb[22].mxu1 }
 0x49d   : > { %v7311_v31 = vpop.f32.mrb[23].mxu1 }
 0x4a8   : > { %v7313_v34 = vpop.f32.mrb[24].mxu1 }
 0x4a9   : > { %7742 = vst [vmem:[#allocation12_spill] sm:$0xff] %v7313_v34  ;;  %v7315_v41 = vpop.f32.mrb[25].mxu1  ;;  %v7319_v60 = vmul.f32 %v7313_v34, %v7313_v34 }
 0x4aa   : > { %7743 = vst [vmem:[#allocation13_spill] sm:$0xff] %v7315_v41  ;;  %v7323_v57 = vmul.f32 %v7315_v41, %v7315_v41  ;;  %v6245_v41 = vld [vmem:[%s6464_s7 + $0x38] sm:$0xff] }
 0x4ab   : > { %7744 = vst [vmem:[#allocation14_spill] sm:$0xff] %v7319_v60  ;;  %v6242_v60 = vld [vmem:[%s6450_s9 + $0x30] sm:$0xff] }
 0x4ac   : > { %7745 = vst [vmem:[#allocation15_spill] sm:$0xff] %v7323_v57  ;;  %v6241_v57 = vld [vmem:[%s6464_s7 + $0x8] sm:$0xff] }
 0x4b4   : > { %v7325_v54 = vpop.f32.mrb[26].mxu1 }
 0x4b5   : > { %7746 = vst [vmem:[#allocation16_spill] sm:$0xff] %v7325_v54  ;;  %v7329_v39 = vpop.f32.mrb[27].mxu1  ;;  %v6243_v54 = vld [vmem:[%s6464_s7 + $0x30] sm:$0xff] }
 0x4b6   : > { %7747 = vst [vmem:[#allocation17_spill] sm:$0xff] %v7329_v39  ;;  %v4222_v39 = vsub.f32 %v6241_v57, %v6240_v20 }
 0x4c0   : > { %v7333_v38 = vpop.f32.mrb[28].mxu1 }
 0x4c1   : > { %3460 = vrot.lane.b32.xlu0 %v7333_v38, %s6336_s22  ;;  %v3273_v48 = vpop.f32.mrb[29].mxu1 }
 0x4c2   : > { %3462 = vrot.lane.b32.xlu1 %v3273_v48, %s6336_s22 }
 0x4c4   : > { %v7338_v22 = vpop.f32.mrb[30].mxu1 }
 0x4c5   : > { %3464 = vrot.lane.b32.xlu0 %v7338_v22, %s6336_s22  ;;  %v3279_v44 = vpop.f32.mrb[31].mxu1 }
 0x4c6   : > { %3466 = vrot.lane.b32.xlu1 %v3279_v44, %s6336_s22 }
 0x4c8   : > { %v7343_v2 = vpop.f32.mrb[32].mxu1 }
 0x4c9   : > { %3632 = vrot.lane.b32.xlu0 %v3273_v48, %s6333_s10  ;;  %v3285_v13 = vpop.f32.mrb[33].mxu1 }
 0x4ca   : > { %3634 = vrot.lane.b32.xlu1 %v3279_v44, %s6333_s10 }
 0x4cc   : > { %v7347_v53 = vpop.f32.mrb[34].mxu1 }
 0x4cd   : > { %3831 = vrot.lane.b32.xlu0 %v7343_v2, %s6337_s25  ;;  %v3291_v12 = vpop.f32.mrb[35].mxu1 }
 0x4ce   : > { %3833 = vrot.lane.b32.xlu1 %v7347_v53, %s6337_s25 }
 0x4d1   : > { %4005 = vrot.lane.b32.xlu0 %v3285_v13, %s6338_s26 }
 0x4d2   : > { %4007 = vrot.lane.b32.xlu1 %v3291_v12, %s6338_s26 }
 0x4d5   : > { %1858 = vrot.lane.b32.xlu0 %v6913_v7, %s6336_s22 }
 0x4d6   : > { %1860 = vrot.lane.b32.xlu1 %v6917_v9, %s6336_s22 }
 0x4d9   : > { %1862 = vrot.lane.b32.xlu0 %v6921_v18, %s6336_s22 }
 0x4da   : > { %1864 = vrot.lane.b32.xlu1 %v6927_v23, %s6336_s22 }
 0x4dd   : > { %2030 = vrot.lane.b32.xlu0 %v6917_v9, %s6333_s10 }
 0x4de   : > { %2032 = vrot.lane.b32.xlu1 %v6927_v23, %s6333_s10 }
 0x4e1   : > { %2227 = vrot.lane.b32.xlu0 %v6933_v27, %s6337_s25 }
 0x4e2   : > { %2229 = vrot.lane.b32.xlu1 %v6955_v43, %s6337_s25 }
 0x4e5   : > { %2401 = vrot.lane.b32.xlu0 %v6937_v28, %s6338_s26 }
 0x4e6   : > { %2403 = vrot.lane.b32.xlu1 %v6961_v35, %s6338_s26 }
 0x4e9   : > { %2770 = vrot.lane.b32.xlu0 %v6977_v40, %s6336_s22 }
 0x4ea   : > { %2772 = vrot.lane.b32.xlu1 %v6983_v45, %s6336_s22 }
 0x4ed   : > { %2774 = vrot.lane.b32.xlu0 %v6991_v52, %s6336_s22 }
 0x4ee   : > { %2776 = vrot.lane.b32.xlu1 %v7005_v0, %s6336_s22 }
 0x4f1   : > { %2942 = vrot.lane.b32.xlu0 %v6983_v45, %s6333_s10  ;;  %v4618_v45 = vld [vmem:[%s7714_s3 + $0xc0] sm:$0xff] }
 0x4f2   : > { %2944 = vrot.lane.b32.xlu1 %v7005_v0, %s6333_s10  ;;  %v4619_v0 = vld [vmem:[%s7714_s3 + $0xc8] sm:$0xff] }
 0x4f5   : > { %3375 = vrot.lane.b32.xlu0 %v7333_v38, %s6337_s25 }
 0x4f6   : > { %3377 = vrot.lane.b32.xlu1 %v7338_v22, %s6337_s25 }
 0x4f9   : > { %3549 = vrot.lane.b32.xlu0 %v3273_v48, %s6338_s26  ;;  %v4620_v48 = vld [vmem:[%s7714_s3 + $0xd0] sm:$0xff] }
 0x4fa   : > { %3551 = vrot.lane.b32.xlu1 %v3279_v44, %s6338_s26 }
 0x4fd   : > { %3916 = vrot.lane.b32.xlu0 %v7343_v2, %s6336_s22 }
 0x4fe   : > { %3918 = vrot.lane.b32.xlu1 %v3285_v13, %s6336_s22 }
 0x501   : > { %3920 = vrot.lane.b32.xlu0 %v7347_v53, %s6336_s22 }
 0x502   : > { %3922 = vrot.lane.b32.xlu1 %v3291_v12, %s6336_s22 }
 0x505   : > { %4088 = vrot.lane.b32.xlu0 %v3285_v13, %s6333_s10  ;;  %v7418_v13 = vpack.c.bf16 %v4619_v0, %v4618_v45  ;;  %v6239_v45 = vld [vmem:[%s6464_s7] sm:$0xff] }
 0x506   : > { %4090 = vrot.lane.b32.xlu1 %v3291_v12, %s6333_s10 }
 0x533   : > { %v3461_v7 = vpop.permute.xlu0 %3460 }
 0x534   : > { %v3463_v9 = vpop.permute.xlu1 %3462 }
 0x535   : > { %v3468_v18 = vsel %vm697_vm4, %v3461_v7, %v3463_v9  ;;  %v4621_v7 = vld [vmem:[%s7714_s3 + $0xd8] sm:$0xff] }
 0x536   : > { %5353 = vmatprep.mubr.msk.f32.mxu1 %vm384_vm0, %v3468_v18 }
 0x537   : > { %v3465_v23 = vpop.permute.xlu0 %3464 }
 0x538   : > { %v3467_v27 = vpop.permute.xlu1 %3466 }
 0x539   : > { %v3469_v28 = vsel %vm697_vm4, %v3465_v23, %v3467_v27  ;;  %v7432_v23 = vpack.c.bf16 %v4621_v7, %v4620_v48  ;;  %v4622_v27 = vld [vmem:[%s7714_s3 + $0xe0] sm:$0xff]  ;;  %v4233_v48 = vsub.f32 %v6243_v54, %v6242_v60  ;;  %v6244_v7 = vld [vmem:[%s6450_s9 + $0x38] sm:$0xff] }
 0x53a   : > { %5354 = vmatmul.mubr.msk.f32.vlgmr.msra.gmra.mrb[36].mxu1 %vm384_vm0, %v3469_v28  ;;  %v4623_v28 = vld [vmem:[%s7714_s3 + $0xe8] sm:$0xff]  ;;  %v4234_v34 = vsub.f32 %v6245_v41, %v6244_v7  ;;  %v4228_v41 = vand.u32 2147483647, %v4222_v39  ;;  %v6249_v39 = vld [vmem:[%s6464_s7 + $0x18] sm:$0xff]  ;;  %v6250_v7 = vld [vmem:[%s6464_s7 + $0x40] sm:$0xff] }
 0x53b   : > { %5878 = vmatpush3.bf16.msra.mxu1 %v7162_v32  ;;  %v3633_v43 = vpop.permute.xlu0 %3632  ;;  %v7452_v20 = vpack.c.bf16 %v4623_v28, %v4622_v27  ;;  %v4239_v54 = vand.u32 2147483647, %v4233_v48  ;;  %v6251_v48 = vld [vmem:[%s6450_s9 + $0x40] sm:$0xff] }
 0x53c   : > { %5383 = vmatprep.mubr.msk.f32.mxu1 %vm384_vm0, %v3633_v43  ;;  %v3635_v35 = vpop.permute.xlu1 %3634  ;;  %5880 = vmatprep.subr.bf16.mxu1 %v7172_v19  ;;  %v6238_v43 = vld [vmem:[%s6450_s9] sm:$0xff] }
 0x53d   : > { %v4221_v0 = vsub.f32 %v6239_v45, %v6238_v43  ;;  %v4252_v43 = vsub.f32 %v6951_v42, %v6945_v30  ;;  %v6248_v45 = vld [vmem:[%s6450_s9 + $0x18] sm:$0xff] }
 0x53f   : > { %5882 = vmatpush3.bf16.msra.mxu1 %v7172_v19  ;;  %v3832_v12 = vpop.permute.xlu0 %3831  ;;  %v4227_v60 = vand.u32 2147483647, %v4221_v0  ;;  %v4224_v0 = vsub.f32 %v6249_v39, %v6248_v45  ;;  %v4258_v45 = vand.u32 2147483647, %v4252_v43  ;;  %v6256_v43 = vld [vmem:[%s6450_s9 + $0x28] sm:$0xff] }
 0x540   : > { %v7415_v44 = vpop.permute.xlu1 %3833  ;;  %5884 = vmatprep.subr.bf16.mxu1 %v7184_v49 }
 0x541   : > { %v4245_v42 = vadd.f32 %v4239_v54, %v4227_v60  ;;  %v4253_v60 = vsub.f32 %v7000_v62, %v7008_v3  ;;  %v6254_v54 = vld [vmem:[%s6450_s9 + $0x20] sm:$0xff]  ;;  %v6260_v3 = vld [vmem:[%s6450_s9 + $0x58] sm:$0xff] }
 0x543   : > { %5886 = vmatpush3.bf16.msra.mxu1 %v7184_v49  ;;  %v7427_v9 = vpop.permute.xlu0 %4005 }
 0x544   : > { %v7429_v18 = vpop.permute.xlu1 %4007  ;;  %5900 = vmatprep.subr.bf16.mxu1 %v7418_v13 }
 0x546   : > { %5384 = vmatmul.mubr.msk.f32.vlgmr.msra.gmra.mrb[38].mxu1 %vm384_vm0, %v3635_v35  ;;  %v4240_v35 = vand.u32 2147483647, %v4234_v34  ;;  %v4235_v34 = vsub.f32 %v6250_v7, %v6251_v48  ;;  %v4230_v48 = vand.u32 2147483647, %v4224_v0 }
 0x547   : > { %5902 = vmatpush3.bf16.msra.mxu1 %v7418_v13  ;;  %v1859_v11 = vpop.permute.xlu0 %1858  ;;  %5413 = vmatprep.mubr.msk.f32.mxu1 %vm384_vm0, %v3832_v12  ;;  %v4251_v12 = vsub.f32 %v6948_v33, %v6942_v29  ;;  %v6252_v29 = vld [vmem:[%s6464_s7 + $0x48] sm:$0xff] }
 0x548   : > { %v1861_v24 = vpop.permute.xlu1 %1860  ;;  %5904 = vmatprep.subr.bf16.mxu1 %v7432_v23  ;;  %v6253_v33 = vld [vmem:[%s6450_s9 + $0x48] sm:$0xff] }
 0x549   : > { %v1866_v57 = vsel %vm697_vm4, %v1859_v11, %v1861_v24  ;;  %v6246_v11 = vld [vmem:[%s6450_s9 + $0x10] sm:$0xff]  ;;  %v4236_v50 = vsub.f32 %v6252_v29, %v6253_v33  ;;  %v6261_v29 = vld [vmem:[%s6464_s7 + $0x58] sm:$0xff] }
 0x54a   : > { %5128 = vmatprep.mubr.msk.f32.mxu0 %vm384_vm0, %v1866_v57  ;;  %v6247_v24 = vld [vmem:[%s6464_s7 + $0x10] sm:$0xff]  ;;  %v4238_v33 = vsub.f32 %v6261_v29, %v6260_v3 }
 0x54b   : > { %5906 = vmatpush3.bf16.msra.mxu1 %v7432_v23  ;;  %v1863_v27 = vpop.permute.xlu0 %1862  ;;  %v4223_v28 = vsub.f32 %v6247_v24, %v6246_v11  ;;  %v4246_v11 = vadd.f32 %v4240_v35, %v4228_v41  ;;  %v4257_v24 = vand.u32 2147483647, %v4251_v12  ;;  %v4242_v41 = vand.u32 2147483647, %v4236_v50  ;;  %v6255_v35 = vld [vmem:[%s6464_s7 + $0x20] sm:$0xff] }
 0x54c   : > { %v1865_v57 = vpop.permute.xlu1 %1864  ;;  %5908 = vmatprep.subr.bf16.mxu1 %v7452_v20  ;;  %v4225_v12 = vsub.f32 %v6255_v35, %v6254_v54 }
 0x54d   : > { %v1867_v30 = vsel %vm697_vm4, %v1863_v27, %v1865_v57  ;;  %v4229_v7 = vand.u32 2147483647, %v4223_v28  ;;  %v4241_v27 = vand.u32 2147483647, %v4235_v34  ;;  %v6257_v28 = vld [vmem:[%s6464_s7 + $0x28] sm:$0xff]  ;;  %v6258_v34 = vld [vmem:[%s6450_s9 + $0x50] sm:$0xff] }
 0x54e   : > { %5129 = vmatmul.mubr.msk.f32.vlgmr.msra.gmra.mrb[28].mxu0 %vm384_vm0, %v1867_v30  ;;  %v4226_v0 = vsub.f32 %v6257_v28, %v6256_v43  ;;  %v6259_v57 = vld [vmem:[%s6464_s7 + $0x50] sm:$0xff]  ;;  %v4259_v30 = vand.u32 2147483647, %v4253_v60  ;;  %v4231_v35 = vand.u32 2147483647, %v4225_v12 }
 0x54f   : > { %5686 = vmatpush3.bf16.msra.mxu0 %v6746_v1  ;;  %5910 = vmatpush3.bf16.msra.mxu1 %v7452_v20  ;;  %v2031_v39 = vpop.permute.xlu0 %2030  ;;  %v4254_v1 = vsub.f32 %v7003_v63, %v7011_v6  ;;  %v4237_v62 = vsub.f32 %v6259_v57, %v6258_v34  ;;  %v4263_v63 = vadd.f32 %v4257_v24, %v4245_v42  ;;  %v4244_v28 = vand.u32 2147483647, %v4238_v33 }
 0x550   : > { %5158 = vmatprep.mubr.msk.f32.mxu0 %vm384_vm0, %v2031_v39  ;;  %5688 = vmatprep.subr.bf16.mxu0 %v6756_v8  ;;  %v4264_v6 = vadd.f32 %v4258_v45, %v4246_v11  ;;  %v4247_v50 = vadd.f32 %v4241_v27, %v4229_v7  ;;  %v4248_v39 = vadd.f32 %v4242_v41, %v4230_v48  ;;  %v4232_v43 = vand.u32 2147483647, %v4226_v0  ;;  %v2033_v45 = vpop.permute.xlu1 %2032  ;;  %v7749_v41 = vld [vmem:[#allocation8_spill] sm:$0xff] }
 0x551   : > { %5924 = vmatprep.subr.bf16.mxu1 %v7418_v13  ;;  %v4260_v54 = vand.u32 2147483647, %v4254_v1  ;;  %v4256_v42 = vsub.f32 %v7051_v61, %v7045_v56 }
 0x552   : > { %5414 = vmatmul.mubr.msk.f32.vlgmr.msra.gmra.mrb[40].mxu1 %vm384_vm0, %v7415_v44  ;;  %v4243_v44 = vand.u32 2147483647, %v4237_v62  ;;  %v4265_v11 = vadd.f32 %v4259_v30, %v4247_v50  ;;  %v4250_v48 = vadd.f32 %v4244_v28, %v4232_v43 }
 0x553   : > { %5690 = vmatpush3.bf16.msra.mxu0 %v6756_v8  ;;  %5926 = vmatpush3.bf16.msra.mxu1 %v7418_v13  ;;  %v4255_v8 = vsub.f32 %v7048_v59, %v7042_v36  ;;  %v4266_v24 = vadd.f32 %v4260_v54, %v4248_v39  ;;  %v4262_v60 = vand.u32 2147483647, %v4256_v42  ;;  %v2228_v36 = vpop.permute.xlu0 %2227  ;;  %v7751_v42 = vsub.f32 %v7285_v55, %v7279_v46 }
 0x554   : > { %5443 = vmatprep.mubr.msk.f32.mxu1 %vm384_vm0, %v7427_v9  ;;  %5692 = vmatprep.subr.bf16.mxu0 %v6770_v14  ;;  %v5947_v9 = vpack.c.bf16 %v4264_v6, %v4263_v63  ;;  %v4249_v7 = vadd.f32 %v4243_v44, %v4231_v35  ;;  %v2230_v12 = vpop.permute.xlu1 %2229  ;;  %v2114_v35 = vmul.f32 %v7265_v37, %v7265_v37 }
 0x555   : > { %5928 = vmatprep.subr.bf16.mxu1 %v7432_v23  ;;  %v4261_v27 = vand.u32 2147483647, %v4255_v8  ;;  %v5951_v56 = vpack.c.bf16 %v4266_v24, %v4265_v11  ;;  %v4268_v61 = vadd.f32 %v4262_v60, %v4250_v48 }
 0x557   : > { %5694 = vmatpush3.bf16.msra.mxu0 %v6770_v14  ;;  %5930 = vmatpush3.bf16.msra.mxu1 %v7432_v23  ;;  %v7748_v14 = vld [vmem:[#allocation7_spill] sm:$0xff]  ;;  %v4267_v59 = vadd.f32 %v4261_v27, %v4249_v7  ;;  %v2402_v0 = vpop.permute.xlu0 %2401 }
 0x558   : > { %5708 = vmatprep.subr.bf16.mxu0 %v7104_v16  ;;  %5932 = vmatprep.subr.bf16.mxu1 %v7452_v20 }
 0x559   : > { %v5955_v1 = vpack.c.bf16 %v4268_v61, %v4267_v59 }
 0x55a   : > { %5159 = vmatmul.mubr.msk.f32.vlgmr.msra.gmra.mrb[30].mxu0 %vm384_vm0, %v2033_v45 }
 0x55b   : > { %5710 = vmatpush3.bf16.msra.mxu0 %v7104_v16  ;;  %5188 = vmatprep.mubr.msk.f32.mxu0 %vm384_vm0, %v2228_v36 }
 0x55c   : > { %5934 = vmatpush3.bf16.msra.mxu1 %v7452_v20  ;;  %5712 = vmatprep.subr.bf16.mxu0 %v7748_v14 }
 0x55d   : > { %5948 = vmatprep.subr.bf16.mxu1 %v5947_v9 }
 0x55f   : > { %5444 = vmatmul.mubr.msk.f32.vlgmr.msra.gmra.mrb[42].mxu1 %vm384_vm0, %v7429_v18  ;;  %5714 = vmatpush3.bf16.msra.mxu0 %v7748_v14 }
 0x560   : > { %5950 = vmatpush3.bf16.msra.mxu1 %v5947_v9  ;;  %5716 = vmatprep.subr.bf16.mxu0 %v7749_v41 }
 0x561   : > { %5952 = vmatprep.subr.bf16.mxu1 %v5951_v56  ;;  %5473 = vmatprep.mubr.msk.f32.mxu1 %vm384_vm0, %v7251_v5  ;;  %v2404_v5 = vpop.permute.xlu1 %2403 }
 0x563   : > { %5718 = vmatpush3.bf16.msra.mxu0 %v7749_v41 }
 0x564   : > { %5954 = vmatpush3.bf16.msra.mxu1 %v5951_v56  ;;  %5732 = vmatprep.subr.bf16.mxu0 %v7104_v16 }
 0x565   : > { %5956 = vmatprep.subr.bf16.mxu1 %v5955_v1 }
 0x566   : > { %5189 = vmatmul.mubr.msk.f32.vlgmr.msra.gmra.mrb[32].mxu0 %vm384_vm0, %v2230_v12  ;;  %v7752_v12 = vld [vmem:[#allocation5_spill] sm:$0xff] }
 0x567   : > { %5734 = vmatpush3.bf16.msra.mxu0 %v7104_v16  ;;  %5218 = vmatprep.mubr.msk.f32.mxu0 %vm384_vm0, %v2402_v0  ;;  %v2771_v16 = vpop.permute.xlu0 %2770 }
 0x568   : > { %5958 = vmatpush3.bf16.msra.mxu1 %v5955_v1  ;;  %5736 = vmatprep.subr.bf16.mxu0 %v7748_v14 }
 0x56b   : > { %5474 = vmatmul.mubr.msk.f32.vlgmr.msra.gmra.mrb[44].mxu1 %vm384_vm0, %v7261_v10  ;;  %5738 = vmatpush3.bf16.msra.mxu0 %v7748_v14  ;;  %v2773_v10 = vpop.permute.xlu1 %2772 }
 0x56c   : > { %5740 = vmatprep.subr.bf16.mxu0 %v7749_v41  ;;  %v2778_v18 = vsel %vm697_vm4, %v2771_v16, %v2773_v10 }
 0x56f   : > { %5742 = vmatpush3.bf16.msra.mxu0 %v7749_v41  ;;  %v2777_v34 = vpop.permute.xlu1 %2776 }
 0x570   : > { %5756 = vmatprep.subr.bf16.mxu0 %v7162_v32 }
 0x572   : > { %5219 = vmatmul.mubr.msk.f32.vlgmr.msra.gmra.mrb[34].mxu0 %vm384_vm0, %v2404_v5  ;;  %v7753_v5 = vld [vmem:[#allocation6_spill] sm:$0xff] }
 0x573   : > { %5758 = vmatpush3.bf16.msra.mxu0 %v7162_v32  ;;  %5248 = vmatprep.mubr.msk.f32.mxu0 %vm384_vm0, %v6977_v40  ;;  %v2775_v40 = vpop.permute.xlu0 %2774 }
 0x574   : > { %5760 = vmatprep.subr.bf16.mxu0 %v7172_v19  ;;  %v2779_v57 = vsel %vm697_vm4, %v2775_v40, %v2777_v34 }
 0x577   : > { %5762 = vmatpush3.bf16.msra.mxu0 %v7172_v19  ;;  %v2943_v62 = vpop.permute.xlu0 %2942 }
 0x578   : > { %5764 = vmatprep.subr.bf16.mxu0 %v7184_v49 }
 0x57b   : > { %5766 = vmatpush3.bf16.msra.mxu0 %v7184_v49  ;;  %v3376_v3 = vpop.permute.xlu0 %3375 }
 0x57c   : > { %5780 = vmatprep.subr.bf16.mxu0 %v7162_v32 }
 0x57e   : > { %5249 = vmatmul.mubr.msk.f32.vlgmr.msra.gmra.mrb[36].mxu0 %vm384_vm0, %v6991_v52  ;;  %v2945_v52 = vpop.permute.xlu1 %2944 }
 0x57f   : > { %5782 = vmatpush3.bf16.msra.mxu0 %v7162_v32  ;;  %5278 = vmatprep.mubr.msk.f32.mxu0 %vm384_vm0, %v2778_v18  ;;  %v3550_v29 = vpop.permute.xlu0 %3549 }
 0x580   : > { %5784 = vmatprep.subr.bf16.mxu0 %v7172_v19 }
 0x583   : > { %5786 = vmatpush3.bf16.msra.mxu0 %v7172_v19 }
 0x584   : > { %5788 = vmatprep.subr.bf16.mxu0 %v7184_v49 }
 0x587   : > { %5790 = vmatpush3.bf16.msra.mxu0 %v7184_v49 }
 0x588   : > { %5804 = vmatprep.subr.bf16.mxu0 %v7162_v32 }
 0x58a   : > { %5279 = vmatmul.mubr.msk.f32.vlgmr.msra.gmra.mrb[38].mxu0 %vm384_vm0, %v2779_v57 }
 0x58b   : > { %5806 = vmatpush3.bf16.msra.mxu0 %v7162_v32  ;;  %5308 = vmatprep.mubr.msk.f32.mxu0 %vm384_vm0, %v2943_v62 }
 0x58c   : > { %5808 = vmatprep.subr.bf16.mxu0 %v7172_v19 }
 0x58f   : > { %5810 = vmatpush3.bf16.msra.mxu0 %v7172_v19 }
 0x590   : > { %5812 = vmatprep.subr.bf16.mxu0 %v7184_v49 }
 0x593   : > { %5814 = vmatpush3.bf16.msra.mxu0 %v7184_v49 }
 0x594   : > { %5828 = vmatprep.subr.bf16.mxu0 %v7162_v32 }
 0x596   : > { %5309 = vmatmul.mubr.msk.f32.vlgmr.msra.gmra.mrb[40].mxu0 %vm384_vm0, %v2945_v52 }
 0x597   : > { %5830 = vmatpush3.bf16.msra.mxu0 %v7162_v32  ;;  %5323 = vmatprep.mubr.msk.f32.mxu0 %vm384_vm0, %v7333_v38  ;;  %v3378_v38 = vpop.permute.xlu1 %3377 }
 0x598   : > { %5832 = vmatprep.subr.bf16.mxu0 %v7172_v19 }
 0x59b   : > { %5834 = vmatpush3.bf16.msra.mxu0 %v7172_v19 }
 0x59c   : > { %5836 = vmatprep.subr.bf16.mxu0 %v7184_v49 }
 0x59f   : > { %5838 = vmatpush3.bf16.msra.mxu0 %v7184_v49 }
 0x5a0   : > { %5840 = vmatprep.subr.bf16.mxu0 %v7162_v32 }
 0x5a2   : > { %5324 = vmatmul.mubr.msk.f32.vlgmr.msra.gmra.mrb[42].mxu0 %vm384_vm0, %v7338_v22  ;;  %v3552_v22 = vpop.permute.xlu1 %3551 }
 0x5a3   : > { %5842 = vmatpush3.bf16.msra.mxu0 %v7162_v32  ;;  %5338 = vmatprep.mubr.msk.f32.mxu0 %vm384_vm0, %v3376_v3 }
 0x5a4   : > { %5844 = vmatprep.subr.bf16.mxu0 %v7172_v19 }
 0x5a7   : > { %5846 = vmatpush3.bf16.msra.mxu0 %v7172_v19 }
 0x5a8   : > { %5848 = vmatprep.subr.bf16.mxu0 %v7184_v49 }
 0x5ab   : > { %5850 = vmatpush3.bf16.msra.mxu0 %v7184_v49 }
 0x5ac   : > { %5864 = vmatprep.subr.bf16.mxu0 %v7162_v32 }
 0x5ae   : > { %5339 = vmatmul.mubr.msk.f32.vlgmr.msra.gmra.mrb[44].mxu0 %vm384_vm0, %v3378_v38 }
 0x5af   : > { %5866 = vmatpush3.bf16.msra.mxu0 %v7162_v32  ;;  %5368 = vmatprep.mubr.msk.f32.mxu0 %vm384_vm0, %v3550_v29  ;;  %v3917_v32 = vpop.permute.xlu0 %3916 }
 0x5b0   : > { %5868 = vmatprep.subr.bf16.mxu0 %v7172_v19 }
 0x5b3   : > { %5870 = vmatpush3.bf16.msra.mxu0 %v7172_v19  ;;  %v3919_v19 = vpop.permute.xlu1 %3918 }
 0x5b4   : > { %5872 = vmatprep.subr.bf16.mxu0 %v7184_v49 }
 0x5b7   : > { %5874 = vmatpush3.bf16.msra.mxu0 %v7184_v49  ;;  %v3924_v49 = vsel %vm697_vm4, %v3917_v32, %v3919_v19  ;;  %v3923_v33 = vpop.permute.xlu1 %3922 }
 0x5b8   : > { %5888 = vmatprep.subr.bf16.mxu0 %v7418_v13 }
 0x5ba   : > { %5369 = vmatmul.mubr.msk.f32.vlgmr.msra.gmra.mrb[46].mxu0 %vm384_vm0, %v3552_v22 }
 0x5bb   : > { %5890 = vmatpush3.bf16.msra.mxu0 %v7418_v13  ;;  %5398 = vmatprep.mubr.msk.f32.mxu0 %vm384_vm0, %v7343_v2  ;;  %v3921_v2 = vpop.permute.xlu0 %3920 }
 0x5bc   : > { %5892 = vmatprep.subr.bf16.mxu0 %v7432_v23  ;;  %v3925_v63 = vsel %vm697_vm4, %v3921_v2, %v3923_v33  ;;  %v7756_v33 = vld [vmem:[#allocation11_spill] sm:$0xff] }
 0x5bf   : > { %5894 = vmatpush3.bf16.msra.mxu0 %v7432_v23  ;;  %v4089_v6 = vpop.permute.xlu0 %4088 }
 0x5c0   : > { %5896 = vmatprep.subr.bf16.mxu0 %v7452_v20 }
 0x5c3   : > { %5898 = vmatpush3.bf16.msra.mxu0 %v7452_v20 }
 0x5c4   : > { %5912 = vmatprep.subr.bf16.mxu0 %v7418_v13 }
 0x5c6   : > { %5399 = vmatmul.mubr.msk.f32.vlgmr.msra.gmra.mrb[48].mxu0 %vm384_vm0, %v7347_v53  ;;  %v4091_v53 = vpop.permute.xlu1 %4090 }
 0x5c7   : > { %5914 = vmatpush3.bf16.msra.mxu0 %v7418_v13  ;;  %5428 = vmatprep.mubr.msk.f32.mxu0 %vm384_vm0, %v3924_v49 }
 0x5c8   : > { %5916 = vmatprep.subr.bf16.mxu0 %v7432_v23 }
 0x5cb   : > { %5918 = vmatpush3.bf16.msra.mxu0 %v7432_v23 }
 0x5cc   : > { %5920 = vmatprep.subr.bf16.mxu0 %v7452_v20 }
 0x5cf   : > { %5922 = vmatpush3.bf16.msra.mxu0 %v7452_v20 }
 0x5d0   : > { %5936 = vmatprep.subr.bf16.mxu0 %v7418_v13 }
 0x5d2   : > { %5429 = vmatmul.mubr.msk.f32.vlgmr.msra.gmra.mrb[50].mxu0 %vm384_vm0, %v3925_v63 }
 0x5d3   : > { %5938 = vmatpush3.bf16.msra.mxu0 %v7418_v13  ;;  %5458 = vmatprep.mubr.msk.f32.mxu0 %vm384_vm0, %v4089_v6 }
 0x5d4   : > { %5940 = vmatprep.subr.bf16.mxu0 %v7432_v23 }
 0x5d7   : > { %5942 = vmatpush3.bf16.msra.mxu0 %v7432_v23 }
 0x5d8   : > { %5944 = vmatprep.subr.bf16.mxu0 %v7452_v20 }
 0x5db   : > { %5946 = vmatpush3.bf16.msra.mxu0 %v7452_v20 }
 0x5dc   : > { %5960 = vmatprep.subr.bf16.mxu0 %v7418_v13 }
 0x5de   : > { %5459 = vmatmul.mubr.msk.f32.vlgmr.msra.gmra.mrb[52].mxu0 %vm384_vm0, %v4091_v53 }
 0x5df   : > { %5962 = vmatpush3.bf16.msra.mxu0 %v7418_v13  ;;  %v2113_v13 = vmul.f32 %v7269_v17, %v7269_v17 }
 0x5e0   : > { %5964 = vmatprep.subr.bf16.mxu0 %v7432_v23 }
 0x5e3   : > { %5966 = vmatpush3.bf16.msra.mxu0 %v7432_v23 }
 0x5e4   : > { %5968 = vmatprep.subr.bf16.mxu0 %v7452_v20 }
 0x5e7   : > { %5970 = vmatpush3.bf16.msra.mxu0 %v7452_v20  ;;  %v7750_v20 = vsub.f32 %v7281_v47, %v7277_v26 }
 0x60d   : > { %v7616_v50 = vpop.f32.mrb[36].mxu1 }
 0x60e   : > { %v7618_v30 = vpop.f32.mrb[37].mxu1 }
 0x619   : > { %v7620_v39 = vpop.f32.mrb[38].mxu1 }
 0x61a   : > { %v7622_v54 = vpop.f32.mrb[39].mxu1 }
 0x621   : > { %v5130_v43 = vpop.f32.mrb[28].mxu0 }
 0x622   : > { %v2120_v23 = vsub.f32 %v5130_v43, %v2114_v35  ;;  %v1938_v44 = vpop.f32.mrb[29].mxu0 }
 0x623   : > { %v2119_v28 = vsub.f32 %v1938_v44, %v2113_v13 }
 0x624   : > { %v2130_v8 = vadd.f32 %v7750_v20, %v2120_v23  ;;  %v7759_v23 = vld [vmem:[#allocation12_spill] sm:$0xff]  ;;  %v7760_v20 = vld [vmem:[#allocation13_spill] sm:$0xff] }
 0x625   : > { %v2129_v9 = vadd.f32 %v7751_v42, %v2119_v28  ;;  %v7634_v11 = vpop.f32.mrb[40].mxu1 }
 0x626   : > { %v2132_v24 = vadd.f32 0.0009, %v2130_v8  ;;  %v7636_v45 = vpop.f32.mrb[41].mxu1  ;;  %v7642_v47 = vmul.f32 %v7634_v11, %v7634_v11 }
 0x627   : > { %v2131_v37 = vadd.f32 0.0009, %v2129_v9  ;;  %v7646_v60 = vmul.f32 %v7636_v45, %v7636_v45 }
 0x628   : > { %6214 = vrcp.f32 %v2132_v24 }
 0x629   : > { %6216 = vrcp.f32 %v2131_v37 }
 0x62d   : > { %v5160_v17 = vpop.f32.mrb[30].mxu0 }
 0x62e   : > { %v2124_v7 = vsub.f32 %v5160_v17, %v7272_v21  ;;  %v2104_v48 = vpop.f32.mrb[31].mxu0 }
 0x62f   : > { %v2123_v27 = vsub.f32 %v2104_v48, %v7275_v15 }
 0x630   : > { %v2126_v26 = vmul.f32 2.0, %v2124_v7 }
 0x631   : > { %v2125_v46 = vmul.f32 2.0, %v2123_v27 }
 0x632   : > { %v6215_v55 = vpop.eup %6214  ;;  %v2128_v36 = vadd.f32 0.0009, %v2126_v26  ;;  %v7648_v14 = vpop.f32.mrb[42].mxu1 }
 0x633   : > { %v6217_v56 = vpop.eup %6216  ;;  %v2127_v59 = vadd.f32 0.0009, %v2125_v46  ;;  %v4180_v21 = vsub.f32 %v7648_v14, %v7642_v47  ;;  %v7652_v15 = vpop.f32.mrb[43].mxu1 }
 0x634   : > { %v2136_v61 = vmul.f32 %v6215_v55, %v2128_v36  ;;  %v4179_v41 = vsub.f32 %v7652_v15, %v7646_v60 }
 0x635   : > { %v2134_v1 = vmul.f32 %v6217_v56, %v2127_v59 }
 0x636   : > { %v2138_v0 = vmul.f32 %v2136_v61, %v7752_v12 }
 0x637   : > { %v2137_v16 = vmul.f32 %v2134_v1, %v7753_v5  ;;  %v7761_v5 = vld [vmem:[#allocation16_spill] sm:$0xff] }
 0x639   : > { %v5190_v10 = vpop.f32.mrb[32].mxu0 }
 0x63a   : > { %v2572_v18 = vmul.f32 %v5190_v10, %v7289_v58  ;;  %v2301_v40 = vpop.f32.mrb[33].mxu0  ;;  %v2570_v38 = vmul.f32 %v5190_v10, %v5190_v10  ;;  %v7754_v58 = vld [vmem:[#allocation9_spill] sm:$0xff]  ;;  %v7762_v10 = vld [vmem:[#allocation14_spill] sm:$0xff] }
 0x63b   : > { %v2571_v34 = vmul.f32 %v2301_v40, %v7291_v25  ;;  %v2569_v29 = vmul.f32 %v2301_v40, %v2301_v40  ;;  %v7755_v2 = vsub.f32 %v7301_v4, %v7754_v58 }
 0x63c   : > { %v2578_v57 = vsub.f32 %v7309_v51, %v2572_v18  ;;  %v7757_v51 = vld [vmem:[#allocation10_spill] sm:$0xff]  ;;  %v7763_v18 = vsub.f32 %v7761_v5, %v7762_v10 }
 0x63d   : > { %v2577_v62 = vsub.f32 %v7311_v31, %v2571_v34  ;;  %v7758_v63 = vsub.f32 %v7756_v33, %v7757_v51  ;;  %v7764_v34 = vld [vmem:[#allocation17_spill] sm:$0xff] }
 0x63e   : > { %v5475_v52 = vpop.f32.mrb[44].mxu1  ;;  %v2580_v35 = vmul.f32 2.0, %v2578_v57  ;;  %v7765_v57 = vld [vmem:[#allocation15_spill] sm:$0xff] }
 0x63f   : > { %v4335_v3 = vpop.f32.mrb[45].mxu1  ;;  %v2579_v43 = vmul.f32 2.0, %v2577_v62  ;;  %v7766_v62 = vsub.f32 %v7764_v34, %v7765_v57 }
 0x640   : > { %5488 = vmatprep.mubr.msk.f32.mxu0 %vm384_vm0, %v4335_v3  ;;  %v2582_v42 = vadd.f32 0.0009, %v2580_v35 }
 0x641   : > { %5489 = vmatmul.mubr.msk.f32.vlgmr.msra.gmra.mrb[54].mxu0 %vm384_vm0, %v5475_v52  ;;  %v2581_v4 = vadd.f32 0.0009, %v2579_v43 }
 0x645   : > { %v5220_v22 = vpop.f32.mrb[34].mxu0 }
 0x646   : > { %v2576_v32 = vsub.f32 %v5220_v22, %v2570_v38  ;;  %v2475_v19 = vpop.f32.mrb[35].mxu0 }
 0x647   : > { %v2575_v49 = vsub.f32 %v2475_v19, %v2569_v29 }
 0x648   : > { %v2584_v25 = vadd.f32 %v2576_v32, %v7755_v2 }
 0x649   : > { %v2583_v31 = vadd.f32 %v2575_v49, %v7758_v63 }
 0x64a   : > { %v2586_v6 = vadd.f32 0.0009, %v2584_v25 }
 0x64b   : > { %v2585_v53 = vadd.f32 0.0009, %v2583_v31 }
 0x64c   : > { %6218 = vrcp.f32 %v2586_v6 }
 0x64d   : > { %6220 = vrcp.f32 %v2585_v53 }
 0x651   : > { %v5250_v13 = vpop.f32.mrb[36].mxu0 }
 0x652   : > { %v3030_v44 = vmul.f32 %v7759_v23, %v5250_v13  ;;  %v2676_v28 = vpop.f32.mrb[37].mxu0  ;;  %v3026_v26 = vmul.f32 %v5250_v13, %v5250_v13 }
 0x653   : > { %v3029_v8 = vmul.f32 %v7760_v20, %v2676_v28  ;;  %v3025_v55 = vmul.f32 %v2676_v28, %v2676_v28 }
 0x656   : > { %v6219_v9 = vpop.eup %6218 }
 0x657   : > { %v6221_v24 = vpop.eup %6220  ;;  %v2590_v37 = vmul.f32 %v6219_v9, %v2582_v42 }
 0x658   : > { %v2588_v17 = vmul.f32 %v6221_v24, %v2581_v4 }
 0x659   : > { %v2592_v7 = vmul.f32 %v2590_v37, %v2590_v37 }
 0x65a   : > { %v2591_v48 = vmul.f32 %v2588_v17, %v2588_v17 }
 0x65b   : > { %v2594_v27 = vmul.f32 %v2592_v7, %v2590_v37 }
 0x65c   : > { %v2593_v46 = vmul.f32 %v2591_v48, %v2588_v17 }
 0x65d   : > { %v5280_v36 = vpop.f32.mrb[38].mxu0  ;;  %v2596_v56 = vmul.f32 %v2594_v27, %v2138_v0 }
 0x65e   : > { %v3032_v59 = vsub.f32 %v5280_v36, %v3026_v26  ;;  %v2850_v61 = vpop.f32.mrb[39].mxu0  ;;  %v2595_v1 = vmul.f32 %v2593_v46, %v2137_v16 }
 0x65f   : > { %v3031_v12 = vsub.f32 %v2850_v61, %v3025_v55 }
 0x660   : > { %v3042_v40 = vadd.f32 %v7763_v18, %v3032_v59 }
 0x661   : > { %v3041_v52 = vadd.f32 %v7766_v62, %v3031_v12 }
 0x662   : > { %v3044_v3 = vadd.f32 0.0009, %v3042_v40 }
 0x663   : > { %v3043_v38 = vadd.f32 0.0009, %v3041_v52 }
 0x664   : > { %6222 = vrcp.f32 %v3044_v3 }
 0x665   : > { %6224 = vrcp.f32 %v3043_v38 }
 0x669   : > { %v5310_v29 = vpop.f32.mrb[40].mxu0 }
 0x66a   : > { %v3036_v22 = vsub.f32 %v5310_v29, %v3030_v44  ;;  %v3016_v32 = vpop.f32.mrb[41].mxu0 }
 0x66b   : > { %v3035_v0 = vsub.f32 %v3016_v32, %v3029_v8 }
 0x66c   : > { %v3038_v19 = vmul.f32 2.0, %v3036_v22 }
 0x66d   : > { %v3037_v49 = vmul.f32 2.0, %v3035_v0 }
 0x66e   : > { %v6223_v16 = vpop.eup %6222  ;;  %v3040_v58 = vadd.f32 0.0009, %v3038_v19 }
 0x66f   : > { %v6225_v2 = vpop.eup %6224  ;;  %v3039_v25 = vadd.f32 0.0009, %v3037_v49 }
 0x670   : > { %v3048_v33 = vmul.f32 %v6223_v16, %v3040_v58 }
 0x671   : > { %v3046_v51 = vmul.f32 %v6225_v2, %v3039_v25 }
 0x672   : > { %v3050_v63 = vmul.f32 %v3048_v33, %v2596_v56 }
 0x673   : > { %v3049_v31 = vmul.f32 %v3046_v51, %v2595_v1 }
 0x675   : > { %v5325_v6 = vpop.f32.mrb[42].mxu0 }
 0x676   : > { %v3716_v53 = vmul.f32 %v5325_v6, %v5325_v6  ;;  %v3366_v35 = vpop.f32.mrb[43].mxu0 }
 0x677   : > { %v3715_v13 = vmul.f32 %v3366_v35, %v3366_v35 }
 0x678   : > { %v3722_v43 = vsub.f32 %v7616_v50, %v3716_v53 }
 0x679   : > { %v3721_v23 = vsub.f32 %v7618_v30, %v3715_v13 }
 0x681   : > { %v5340_v44 = vpop.f32.mrb[44].mxu0 }
 0x682   : > { %v3720_v28 = vmul.f32 %v5340_v44, %v5325_v6  ;;  %v3449_v20 = vpop.f32.mrb[45].mxu0  ;;  %v3718_v4 = vmul.f32 %v5340_v44, %v5340_v44 }
 0x683   : > { %v3719_v8 = vmul.f32 %v3449_v20, %v3366_v35  ;;  %v3717_v24 = vmul.f32 %v3449_v20, %v3449_v20 }
 0x684   : > { %v3726_v42 = vsub.f32 %v7620_v39, %v3720_v28 }
 0x685   : > { %v3725_v9 = vsub.f32 %v7622_v54, %v3719_v8 }
 0x686   : > { %v3728_v30 = vmul.f32 2.0, %v3726_v42 }
 0x687   : > { %v3727_v36 = vmul.f32 2.0, %v3725_v9 }
 0x688   : > { %v3730_v12 = vadd.f32 0.0009, %v3728_v30 }
 0x689   : > { %v3729_v18 = vadd.f32 0.0009, %v3727_v36 }
 0x68d   : > { %v5370_v37 = vpop.f32.mrb[46].mxu0 }
 0x68e   : > { %v3724_v17 = vsub.f32 %v5370_v37, %v3718_v4  ;;  %v3623_v7 = vpop.f32.mrb[47].mxu0 }
 0x68f   : > { %v3723_v48 = vsub.f32 %v3623_v7, %v3717_v24 }
 0x690   : > { %v3732_v27 = vadd.f32 %v3724_v17, %v3722_v43 }
 0x691   : > { %v3731_v26 = vadd.f32 %v3723_v48, %v3721_v23 }
 0x692   : > { %v3734_v46 = vadd.f32 0.0009, %v3732_v27 }
 0x693   : > { %v3733_v50 = vadd.f32 0.0009, %v3731_v26 }
 0x694   : > { %6226 = vrcp.f32 %v3734_v46 }
 0x695   : > { %6228 = vrcp.f32 %v3733_v50 }
 0x699   : > { %v5400_v55 = vpop.f32.mrb[48].mxu0 }
 0x69a   : > { %v4172_v56 = vmul.f32 %v5400_v55, %v5400_v55  ;;  %v4176_v39 = vmul.f32 %v7634_v11, %v5400_v55  ;;  %v3822_v59 = vpop.f32.mrb[49].mxu0 }
 0x69b   : > { %v4171_v54 = vmul.f32 %v3822_v59, %v3822_v59  ;;  %v4175_v61 = vmul.f32 %v7636_v45, %v3822_v59 }
 0x69c   : > { %v4206_v1 = vadd.f32 %v7642_v47, %v4172_v56  ;;  %v4202_v22 = vmul.f32 2.0, %v4176_v39 }
 0x69d   : > { %v4205_v5 = vadd.f32 %v7646_v60, %v4171_v54  ;;  %v4201_v32 = vmul.f32 2.0, %v4175_v61 }
 0x69e   : > { %v6227_v10 = vpop.eup %6226  ;;  %v4208_v40 = vadd.f32 0.0001, %v4206_v1  ;;  %v4204_v58 = vadd.f32 0.0001, %v4202_v22 }
 0x69f   : > { %v6229_v34 = vpop.eup %6228  ;;  %v4207_v57 = vadd.f32 0.0001, %v4205_v5  ;;  %v3738_v62 = vmul.f32 %v6227_v10, %v3730_v12  ;;  %v4203_v33 = vadd.f32 0.0001, %v4201_v32 }
 0x6a0   : > { %6230 = vrcp.f32 %v4208_v40  ;;  %v3736_v52 = vmul.f32 %v6229_v34, %v3729_v18 }
 0x6a1   : > { %6232 = vrcp.f32 %v4207_v57  ;;  %v3740_v3 = vmul.f32 %v3738_v62, %v3738_v62 }
 0x6a2   : > { %v3739_v11 = vmul.f32 %v3736_v52, %v3736_v52 }
 0x6a3   : > { %v3742_v38 = vmul.f32 %v3740_v3, %v3050_v63 }
 0x6a4   : > { %v3741_v29 = vmul.f32 %v3739_v11, %v3049_v31 }
 0x6a5   : > { %v5430_v45 = vpop.f32.mrb[50].mxu0 }
 0x6a6   : > { %v4178_v0 = vsub.f32 %v5430_v45, %v4172_v56  ;;  %v3996_v19 = vpop.f32.mrb[51].mxu0 }
 0x6a7   : > { %v4177_v49 = vsub.f32 %v3996_v19, %v4171_v54 }
 0x6a8   : > { %v4188_v16 = vadd.f32 %v4180_v21, %v4178_v0 }
 0x6a9   : > { %v4187_v2 = vadd.f32 %v4179_v41, %v4177_v49 }
 0x6aa   : > { %v6231_v25 = vpop.eup %6230  ;;  %v4190_v51 = vadd.f32 0.0009, %v4188_v16 }
 0x6ab   : > { %v6233_v63 = vpop.eup %6232  ;;  %v4212_v31 = vmul.f32 %v6231_v25, %v4204_v58  ;;  %v4189_v6 = vadd.f32 0.0009, %v4187_v2 }
 0x6ac   : > { %v4210_v53 = vmul.f32 %v6233_v63, %v4203_v33  ;;  %6234 = vrcp.f32 %v4190_v51 }
 0x6ad   : > { %6236 = vrcp.f32 %v4189_v6  ;;  %v4214_v20 = vmul.f32 %v4212_v31, %v4212_v31 }
 0x6ae   : > { %v4213_v42 = vmul.f32 %v4210_v53, %v4210_v53 }
 0x6af   : > { %v4216_v17 = vmul.f32 %v4214_v20, %v4212_v31 }
 0x6b0   : > { %v4215_v48 = vmul.f32 %v4213_v42, %v4210_v53 }
 0x6b1   : > { %v5460_v35 = vpop.f32.mrb[52].mxu0 }
 0x6b2   : > { %v4182_v13 = vsub.f32 %v5460_v35, %v4176_v39  ;;  %v4162_v43 = vpop.f32.mrb[53].mxu0 }
 0x6b3   : > { %v4181_v23 = vsub.f32 %v4162_v43, %v4175_v61 }
 0x6b4   : > { %v4184_v47 = vmul.f32 2.0, %v4182_v13 }
 0x6b5   : > { %v4183_v14 = vmul.f32 2.0, %v4181_v23 }
 0x6b6   : > { %v6235_v21 = vpop.eup %6234  ;;  %v4186_v44 = vadd.f32 0.0009, %v4184_v47 }
 0x6b7   : > { %v6237_v28 = vpop.eup %6236  ;;  %v4185_v60 = vadd.f32 0.0009, %v4183_v14 }
 0x6b8   : > { %v4194_v15 = vmul.f32 %v6235_v21, %v4186_v44 }
 0x6b9   : > { %v4192_v41 = vmul.f32 %v6237_v28, %v4185_v60 }
 0x6ba   : > { %v4196_v8 = vmul.f32 %v4194_v15, %v4194_v15 }
 0x6bb   : > { %v4195_v9 = vmul.f32 %v4192_v41, %v4192_v41 }
 0x6bc   : > { %v4198_v4 = vmul.f32 %v4196_v8, %v4194_v15 }
 0x6bd   : > { %v4197_v24 = vmul.f32 %v4195_v9, %v4192_v41 }
 0x6be   : > { %v4200_v37 = vmul.f32 %v4198_v4, %v3742_v38 }
 0x6bf   : > { %v4199_v7 = vmul.f32 %v4197_v24, %v3741_v29 }
 0x6c0   : > { %v4218_v27 = vmul.f32 %v4216_v17, %v4200_v37 }
 0x6c1   : > { %v4217_v26 = vmul.f32 %v4215_v48, %v4199_v7 }
 0x6c2   : > { %v4220_v46 = vsub.f32 1.0, %v4218_v27 }
 0x6c3   : > { %v4219_v30 = vsub.f32 1.0, %v4217_v26 }
 0x6c4   : > { %v4428_v39 = vmul.f32 0.025, %v4220_v46 }
 0x6c5   : > { %v4427_v54 = vmul.f32 0.025, %v4219_v30 }
 0x714   : > { %v5490_v50 = vpop.f32.mrb[54].mxu0 }
 0x715   : > { %v4426_v55 = vmul.f32 0.33333334, %v5490_v50  ;;  %v4416_v36 = vpop.f32.mrb[55].mxu0 }
 0x716   : > { %v4425_v56 = vmul.f32 0.33333334, %v4416_v36 }
 0x717   : > { %v4430_v59 = vmul.f32 0.975, %v4426_v55 }
 0x718   : > { %v4429_v61 = vmul.f32 0.975, %v4425_v56 }
 0x719   : > { %v4432_v1 = vadd.f32 %v4430_v59, %v4428_v39 }
 0x71a   : > { %v4431_v12 = vadd.f32 %v4429_v61, %v4427_v54 }
 0x71b   : > { %v4434_v5 = vsel %vm398_vm2, %v4432_v1, 0.0 }
 0x71c   : > { %v4433_v10 = vsel %vm398_vm2, %v4431_v12, 0.0 }
 0x71d   : > { %v4435_v18 = vadd.f32 %v4434_v5, %v4433_v10 }
 0x71f   : > { %4436 = vadd.xlane.f32.xlu0 %v4435_v18 }
 0x7ac   : > { %v4437_v40 = vpop.xlane.xlu0 %4436 }
 0x7ad   : > { %v4438_v34 = vrot.slane %v4437_v40, 4 }
 0x7af   : > { %v4439_v57 = vadd.f32 %v4438_v34, %v4437_v40 }
 0x7b1   : > { %v4440_v62 = vrot.slane %v4439_v57, 2 }
 0x7b3   : > { %v4441_v52 = vadd.f32 %v4440_v62, %v4439_v57 }
 0x7b5   : > { %v4442_v3 = vrot.slane %v4441_v52, 1 }
 0x7b7   : > { %v4443_v11 = vadd.f32 %v4442_v3, %v4441_v52 }
 0x7b9   : > { %5975 = vpush %v4443_v11 }
 0x7ea   : > { %s5976_s9 = spop %5975 }
 0x7eb   : > { %v4445_v38 = vstv %s5976_s9 }
 0x7ec   : > { %v4446_v29 = vmul.f32 200.0, %v4445_v38 }
 0x7ee   : > { %4448 = vst.msk [vmem:[%s233_s27] sm:$0x1] %vm4447_vm5, %v4446_v29 }
 0x7ef PF: > { %p14_p7 = scmp.ge.s32.totalorder %s6386_s20, 4   ;;  %s7767_s15 = smov %s6318_s16 }
 0x7f0   : > { %s7768_s16 = smov %s6322_s17  ;;  %s7769_s17 = smov %s6396_s23 }
 0x7f1   : > { %s7770_s18 = smov %s6386_s20  ;;  %16 = sbr.rel (!%p14_p7) target bundleno = 3 (0x3), region = 83 }
 0x7f8   :  { %4466 = vsyncpa [#allocation3], 1 }
 0x7f9   :  { %4468 = vsyncpa [#allocation3 + $0x1], 1 }

</bundles_post_ra>
